<compile_context>
chip_gen: v6e
topology: v6e:2x2x1
jax: 0.10.0
libtpu: 0.0.40
codegen_flags: <defaults>
</compile_context>

<pallas_src>
import math

import jax
import jax.numpy as jnp
from jax import lax
from jax.experimental import pallas as pl
from jax.experimental.pallas import tpu as pltpu


# Large-negative instead of -inf for masked logits: with KV tiling, a fully
# masked KV block would otherwise produce (-inf) - (-inf) = NaN in the online
# softmax even for rows that are unmasked in later blocks.
_MASK_VALUE = -1e30


def _vmem_capacity_bytes():
    try:
        return int(pltpu.get_tpu_info().vmem_capacity_bytes)
    except Exception:
        return 64 * 1024 * 1024  # conservative (v7x-sized) fallback


_VMEM_CAP = _vmem_capacity_bytes()
# Scoped-VMEM budget: ~45% of physical, capped; leaves headroom for compiler
# temporaries (score/p intermediates) and double buffering on all generations.
_VMEM_LIMIT = min(int(_VMEM_CAP * 0.45), 100 * 1024 * 1024)
_BIG_VMEM = _VMEM_CAP >= 96 * 1024 * 1024  # v5e / v6e (128 MiB) vs v7x (64 MiB)


def _pick_tile(total, target, align):
    """Largest divisor of `total` that is <= target and a multiple of `align`.

    Falls back to `total` itself (always a legal block: equal to the full dim).
    """
    if total <= target:
        return total
    for t in range(target, 0, -1):
        if total % t == 0 and t % align == 0:
            return t
    return total


def _pick_hb(BH, D, target):
    """Head-batch size: divides BH, keeps the output slab (hb*D) 128-lane
    aligned when possible, and prefers leaving >= 2 head blocks so the
    'parallel' head axis can shard across v7x's 2 TensorCores."""
    divisors = [h for h in range(1, BH + 1) if BH % h == 0]
    aligned = [h for h in divisors if (h * D) % 128 == 0]
    pool = aligned if aligned else [BH]  # full extent is always a legal block
    for h in sorted(pool, reverse=True):
        if h <= target and BH // h >= 2:
            return h
    for h in sorted(pool, reverse=True):
        if h <= target:
            return h
    return min(pool)


# ----------------------------------------------------------------------------
# Tiled linear kernel:  o = x @ w^T + b      (w stored as (N_out, K), no .T)
# ----------------------------------------------------------------------------

def _linear_kernel(x_ref, w_ref, b_ref, o_ref, acc_ref):
    """One (tm, tn) output tile, accumulating over the K grid axis (f32 acc)."""
    k_idx = pl.program_id(2)

    @pl.when(k_idx == 0)
    def _():
        acc_ref[...] = jnp.zeros_like(acc_ref)

    # bf16 x bf16 -> f32 on the MXU; contraction on dim 1 of both operands,
    # so the (N_out, K) weight is consumed without any transpose.
    acc_ref[...] += lax.dot_general(
        x_ref[...], w_ref[...],
        dimension_numbers=(((1,), (1,)), ((), ())),
        preferred_element_type=jnp.float32)

    @pl.when(k_idx == pl.num_programs(2) - 1)
    def _():
        o_ref[...] = (acc_ref[...] + b_ref[...].astype(jnp.float32)
                      ).astype(o_ref.dtype)


def pallas_linear(x2d, weight, bias, *, out_dtype=None,
                  tm_target=512, tn_target=512):
    """x2d: (M, K), weight: (N_out, K), bias: (N_out,) -> (M, N_out)."""
    M, K = x2d.shape
    N_out = weight.shape[0]
    out_dtype = out_dtype if out_dtype is not None else x2d.dtype

    in_sz = jnp.dtype(x2d.dtype).itemsize
    out_sz = jnp.dtype(out_dtype).itemsize
    sub_align = 16 if in_sz == 2 else 8           # bf16 packs 16 sublanes/vreg

    tm = _pick_tile(M, tm_target, sub_align)
    tn = _pick_tile(N_out, tn_target, 128)

    def est(tk_):
        # double-buffered x/w/out blocks + f32 accumulator scratch + bias
        return (2 * (tm * tk_ + tn * tk_) * in_sz
                + 2 * tm * tn * out_sz + tm * tn * 4 + 2 * tn * 4)

    budget = int(_VMEM_LIMIT * 0.9)
    tk = K                                        # prefer un-tiled K (no revisit)
    if est(tk) > budget:
        for cand in (2048, 1024, 512, 256, 128):
            c = _pick_tile(K, cand, 128)
            if est(c) <= budget:
                tk = c
                break
    if est(tk) > budget:                          # last resort: shrink M/N tiles
        tm = _pick_tile(M, 256, sub_align)
        tn = _pick_tile(N_out, 256, 128)

    grid = (M // tm, N_out // tn, K // tk)        # reduction axis last

    return pl.pallas_call(
        _linear_kernel,
        out_shape=jax.ShapeDtypeStruct((M, N_out), out_dtype),
        grid=grid,
        in_specs=[
            pl.BlockSpec((tm, tk), lambda i, j, k: (i, k)),
            pl.BlockSpec((tn, tk), lambda i, j, k: (j, k)),
            pl.BlockSpec((1, tn), lambda i, j, k: (0, j)),
        ],
        out_specs=pl.BlockSpec((tm, tn), lambda i, j, k: (i, j)),
        scratch_shapes=[pltpu.VMEM((tm, tn), jnp.float32)],
        compiler_params=pltpu.CompilerParams(
            dimension_semantics=("parallel", "parallel", "arbitrary"),
            vmem_limit_bytes=_VMEM_LIMIT,
        ),
    )(x2d, weight, bias.reshape(1, N_out))


# ----------------------------------------------------------------------------
# Flash attention (online softmax), heads batched per grid step, lane-dense out
# ----------------------------------------------------------------------------

def _flash_attn_body(q_ref, k_ref, v_ref, mask_ref, o_ref, m_scr, l_scr,
                     acc_scr):
    """q_ref: (hb, Lq, D) bf16; k_ref/v_ref: (hb, Lk, D) bf16;
    mask_ref: (Lq, Lk) bf16 additive or None;
    o_ref: (Lq, hb*D) slab of the (L, N*C) output (lane-dense stores)."""
    kv_idx = pl.program_id(2)
    hb, lq, D = acc_scr.shape

    @pl.when(kv_idx == 0)
    def _():
        m_scr[...] = jnp.full(m_scr.shape, -jnp.inf, m_scr.dtype)
        l_scr[...] = jnp.zeros_like(l_scr)
        acc_scr[...] = jnp.zeros_like(acc_scr)

    # Scores: bf16 operands, f32 accumulation on the MXU.  The softmax scale is
    # already folded into the q projection weights.
    s = jnp.einsum("hqd,hkd->hqk", q_ref[...], k_ref[...],
                   preferred_element_type=jnp.float32)       # (hb, lq, lk) f32
    if mask_ref is not None:
        s = s + mask_ref[...].astype(jnp.float32)[None, :, :]

    # Online softmax bookkeeping in f32 (v5e-safe: no bf16 VPU/EUP there).
    m_prev = m_scr[...]                                       # (hb, lq, 1)
    m_new = jnp.maximum(m_prev, jnp.max(s, axis=-1, keepdims=True))
    alpha = jnp.exp(m_prev - m_new)
    p = jnp.exp(s - m_new)

    # TODO(synk): fold the p row-sum into the PV matmul (ones column appended to
    # v) to move this cross-lane reduce from the XLU onto the MXU.
    l_scr[...] = alpha * l_scr[...] + jnp.sum(p, axis=-1, keepdims=True)
    acc_scr[...] = alpha * acc_scr[...] + jnp.einsum(
        "hqk,hkd->hqd", p.astype(v_ref.dtype), v_ref[...],
        preferred_element_type=jnp.float32)
    m_scr[...] = m_new

    @pl.when(kv_idx == pl.num_programs(2) - 1)
    def _():
        # Per-head lane-slab stores build a lane-dense (lq, hb*D) output block
        # in (L, N*C) layout; this runs once per (b, qi), so the exact divide
        # and the per-head unroll are amortized over the whole kv loop.
        for h in range(hb):
            inv_l = 1.0 / l_scr[h]                            # (lq, 1) f32
            o_ref[:, h * D:(h + 1) * D] = (acc_scr[h] * inv_l
                                           ).astype(o_ref.dtype)


def _flash_attn_kernel_nomask(q_ref, k_ref, v_ref, o_ref, m_scr, l_scr, acc_scr):
    _flash_attn_body(q_ref, k_ref, v_ref, None, o_ref, m_scr, l_scr, acc_scr)


def _flash_attn_kernel_masked(q_ref, k_ref, v_ref, mask_ref, o_ref, m_scr,
                              l_scr, acc_scr):
    _flash_attn_body(q_ref, k_ref, v_ref, mask_ref, o_ref, m_scr, l_scr, acc_scr)


def pallas_flash_attention(q, k, v, attn_mask=None, *, hb_target=8,
                           lq_target=256, lk_target=None):
    """q/k/v: (BH, L, D) bf16 with BH = N*num_heads.
    attn_mask: None or (L, L) bf16 additive mask.
    Returns: (L, BH*D) bf16 — i.e. the (L, N*C) layout out_proj consumes."""
    BH, L, D = q.shape
    if lk_target is None:
        # Bigger kv tiles amortize per-step overhead; keep them smaller on
        # v7x's 64 MiB VMEM.
        lk_target = 512 if _BIG_VMEM else 256

    hb = _pick_hb(BH, D, hb_target)
    lq = _pick_tile(L, lq_target, 16)          # bf16 sublane alignment
    lk = _pick_tile(L, lk_target, 128)         # lane axis of scores/mask

    grid = (BH // hb, L // lq, L // lk)        # KV (reduction) axis last

    q_spec = pl.BlockSpec((hb, lq, D), lambda b, qi, ki: (b, qi, 0))
    kv_spec = pl.BlockSpec((hb, lk, D), lambda b, qi, ki: (b, ki, 0))
    # Lane-dense output slab: block (lq, hb*D) of the (L, BH*D) array.
    o_spec = pl.BlockSpec((lq, hb * D), lambda b, qi, ki: (qi, b))

    scratch = [
        pltpu.VMEM((hb, lq, 1), jnp.float32),  # running max m
        pltpu.VMEM((hb, lq, 1), jnp.float32),  # running denom l
        pltpu.VMEM((hb, lq, D), jnp.float32),  # running numerator acc
    ]
    cparams = pltpu.CompilerParams(
        dimension_semantics=("parallel", "parallel", "arbitrary"),
        vmem_limit_bytes=_VMEM_LIMIT,
    )
    out_shape = jax.ShapeDtypeStruct((L, BH * D), q.dtype)

    if attn_mask is None:
        return pl.pallas_call(
            _flash_attn_kernel_nomask,
            out_shape=out_shape,
            grid=grid,
            in_specs=[q_spec, kv_spec, kv_spec],
            out_specs=o_spec,
            scratch_shapes=scratch,
            compiler_params=cparams,
        )(q, k, v)

    m_spec = pl.BlockSpec((lq, lk), lambda b, qi, ki: (qi, ki))
    return pl.pallas_call(
        _flash_attn_kernel_masked,
        out_shape=out_shape,
        grid=grid,
        in_specs=[q_spec, kv_spec, kv_spec, m_spec],
        out_specs=o_spec,
        scratch_shapes=scratch,
        compiler_params=cparams,
    )(q, k, v, attn_mask)


# ----------------------------------------------------------------------------
# Parameter construction / preparation
# ----------------------------------------------------------------------------

def init_attention_params(key, dim, num_heads):
    head_dim = dim // num_heads
    scale = head_dim ** (-0.5)
    k1, k2, k3 = jax.random.split(key, 3)
    return {
        # in_proj_weight = randn(3*dim, dim) * scale ; in_proj_bias = zeros
        "in_proj_weight": jax.random.normal(k1, (3 * dim, dim), jnp.float32) * scale,
        "in_proj_bias": jnp.zeros((3 * dim,), jnp.float32),
        # out_proj: nn.Linear(dim, dim) -> uniform(-1/sqrt(dim), 1/sqrt(dim))
        "out_proj_weight": jax.random.uniform(
            k2, (dim, dim), jnp.float32, -1.0 / math.sqrt(dim), 1.0 / math.sqrt(dim)),
        "out_proj_bias": jax.random.uniform(
            k3, (dim,), jnp.float32, -1.0 / math.sqrt(dim), 1.0 / math.sqrt(dim)),
    }


def prepare_attention_params(params, dim, num_heads):
    """One-time (per weight update) repack: fold the softmax scale into the q
    rows of the in-projection and pre-cast the MXU weight operands to bf16, so
    no per-call transpose / scale / cast of the weights is needed."""
    C = dim
    scale = (C // num_heads) ** (-0.5)
    w_in = params["in_proj_weight"].at[:C, :].multiply(scale)
    b_in = params["in_proj_bias"].at[:C].multiply(scale)
    return {
        "w_in": w_in.astype(jnp.bfloat16),                 # (3C, C), (N_out, K)
        "b_in": b_in.astype(jnp.float32),
        "w_out": params["out_proj_weight"].astype(jnp.bfloat16),   # (C, C)
        "b_out": params["out_proj_bias"].astype(jnp.float32),
    }


# ----------------------------------------------------------------------------
# Attention module forward
# ----------------------------------------------------------------------------

def attention_forward(prepared, x, num_heads, attn_mask=None):
    """x: (L, N, C).  attn_mask: None, or (L, L) bool / float additive mask."""
    L, N, C = x.shape
    assert C % num_heads == 0
    H = num_heads
    D = C // H
    BH = N * H

    xb = x.astype(jnp.bfloat16)                              # bf16 activations

    # --- in_proj (tiled Pallas matmul, bf16 MXU operands, f32 accumulate) ---
    qkv = pallas_linear(xb.reshape(L * N, C), prepared["w_in"], prepared["b_in"],
                        out_dtype=jnp.bfloat16)              # (L*N, 3C) bf16
    qkv = qkv.reshape(L, N, 3 * C)
    q, k, v = qkv[..., :C], qkv[..., C:2 * C], qkv[..., 2 * C:]

    # view(L, N*H, D).transpose(0, 1) -> (BH, L, D); XLA fuses slice+reshape+
    # transpose into a single (bf16) copy per tensor.
    # TODO(synk): fusing these transposes into the attention BlockSpecs (blocks
    # of shape (lq, hb, D) over the (L, BH, D) layout) needs batch-middle
    # dot_general / 3-D block transposes in Mosaic; kept in XLA for robustness.
    def to_heads(t):
        return t.reshape(L, BH, D).transpose(1, 0, 2)

    q, k, v = to_heads(q), to_heads(k), to_heads(v)

    # --- mask preprocessing (only when a mask is actually supplied) ---
    if attn_mask is not None:
        if attn_mask.dtype == jnp.bool_:
            attn_mask = jnp.where(attn_mask, _MASK_VALUE, 0.0)
        # Clamp -inf so a fully-masked KV *tile* cannot poison the online
        # softmax of rows that are unmasked in other tiles; stream in bf16.
        attn_mask = jnp.maximum(attn_mask.astype(jnp.float32),
                                _MASK_VALUE).astype(jnp.bfloat16)
        # TODO(synk): causal / block-structured masks could be generated
        # in-kernel from broadcasted_iota + block offsets instead of streaming
        # an (L, L) array once per head-batch grid step.
        # TODO(synk): only a shared (L, L) mask is supported; a per-(N*H) 3-D
        # mask would need a mask BlockSpec indexed by the head grid axis.

    # --- flash attention; output already in (L, N*C) layout, lane-dense ---
    o2d = pallas_flash_attention(q, k, v, attn_mask)         # (L, BH*D) bf16

    # (L, N*C) -> (L*N, C) is a free view; out_proj consumes it directly.
    out = pallas_linear(o2d.reshape(L * N, C), prepared["w_out"],
                        prepared["b_out"], out_dtype=x.dtype)
    return out.reshape(L, N, C)


# ----------------------------------------------------------------------------
# Pure-JAX f32 reference (mirrors the PyTorch math directly)
# ----------------------------------------------------------------------------

def attention_reference(params, x, num_heads, attn_mask=None):
    L, N, C = x.shape
    head_dim = C // num_heads
    scale = head_dim ** (-0.5)
    qkv = x @ params["in_proj_weight"].T + params["in_proj_bias"]
    q, k, v = jnp.split(qkv, 3, axis=-1)

    def to_heads(t):
        return t.reshape(L, N * num_heads, head_dim).transpose(1, 0, 2)

    q, k, v = to_heads(q), to_heads(k), to_heads(v)
    attn = jnp.einsum("bld,bmd->blm", q * scale, k)
    if attn_mask is not None:
        if attn_mask.dtype == jnp.bool_:
            attn = attn + jnp.where(attn_mask, -jnp.inf, 0.0)
        else:
            attn = attn + attn_mask
    attn = jax.nn.softmax(attn, axis=-1)
    o = jnp.einsum("blm,bmd->bld", attn, v)
    o = o.transpose(1, 0, 2).reshape(L, N, C)
    return o @ params["out_proj_weight"].T + params["out_proj_bias"]


# ----------------------------------------------------------------------------

if __name__ == "__main__":
    L, N, C, H = 8, 2, 32, 4   # seq, batch, embed_dim, num_heads

    key = jax.random.PRNGKey(0)
    kp, kx = jax.random.split(key)
    params = init_attention_params(kp, C, H)
    prepared = prepare_attention_params(params, C, H)
    x = jax.random.normal(kx, (L, N, C), jnp.float32)

    fwd = jax.jit(attention_forward, static_argnums=(2,))

    # No-mask path (mask-free kernel variant).  Tolerances widened for the
    # bf16-operand MXU path (f32 accumulation / f32 softmax retained).
    out = jax.block_until_ready(fwd(prepared, x, H, None))
    ref = attention_reference(params, x, H, None)
    assert out.shape == (L, N, C)
    assert bool(jnp.allclose(out, ref, atol=1e-1, rtol=1e-1)), "no-mask mismatch"

    # Causal boolean-mask path (masked kernel variant).
    causal = jnp.triu(jnp.ones((L, L), dtype=bool), k=1)
    out_m = jax.block_until_ready(fwd(prepared, x, H, causal))
    ref_m = attention_reference(params, x, H, causal)
    assert bool(jnp.allclose(out_m, ref_m, atol=1e-1, rtol=1e-1)), "masked mismatch"

    print("KERNEL_OK")
</pallas_src>

<mosaic_0001>
module attributes {stable_mosaic.version = 11 : i64} {
  func.func @_linear_kernel(%arg0: i32, %arg1: i32, %arg2: i32, %arg3: memref<16x32xbf16, #tpu.memory_space<vmem>>, %arg4: memref<96x32xbf16, #tpu.memory_space<vmem>>, %arg5: memref<1x96xf32, #tpu.memory_space<vmem>>, %arg6: memref<16x96xbf16, #tpu.memory_space<vmem>>, %arg7: memref<16x96xf32, #tpu.memory_space<vmem>>) attributes {dimension_semantics = [#tpu.dimension_semantics<parallel>, #tpu.dimension_semantics<parallel>, #tpu.dimension_semantics<arbitrary>], iteration_bounds = array<i64: 1, 1, 1>, scalar_prefetch = 0 : i64, scratch_operands = 1 : i64, tpu.core_type = #tpu.core_type<tc>, window_params = [{transform_indices = @transform_0, window_bounds = array<i64: 16, 32>}, {transform_indices = @transform_1, window_bounds = array<i64: 96, 32>}, {transform_indices = @transform_2, window_bounds = array<i64: 1, 96>}, {transform_indices = @transform_3, window_bounds = array<i64: 16, 96>}]} {
    %c0_i32 = arith.constant 0 : i32
    %0 = arith.cmpi eq, %arg2, %c0_i32 : i32
    %1 = arith.extui %0 : i1 to i32
    %c0_i32_0 = arith.constant 0 : i32
    %2 = arith.cmpi ne, %1, %c0_i32_0 : i32
    scf.if %2 {
      %cst_10 = arith.constant 0.000000e+00 : f32
      %12 = vector.broadcast %cst_10 : f32 to vector<16x96xf32>
      %c0_11 = arith.constant 0 : index
      %c0_12 = arith.constant 0 : index
      %13 = vector.load %arg7[%c0_11, %c0_12] : memref<16x96xf32, #tpu.memory_space<vmem>>, vector<16x96xf32>
      tpu.vector_store %arg7[%c0_11, %c0_12], %12 {strides = array<i32>} : memref<16x96xf32, #tpu.memory_space<vmem>>, vector<16x96xf32>,
    } else {
    }
    %c0 = arith.constant 0 : index
    %c0_1 = arith.constant 0 : index
    %3 = vector.load %arg7[%c0, %c0_1] : memref<16x96xf32, #tpu.memory_space<vmem>>, vector<16x96xf32>
    %c0_2 = arith.constant 0 : index
    %c0_3 = arith.constant 0 : index
    %4 = vector.load %arg3[%c0_2, %c0_3] : memref<16x32xbf16, #tpu.memory_space<vmem>>, vector<16x32xbf16>
    %c0_4 = arith.constant 0 : index
    %c0_5 = arith.constant 0 : index
    %5 = vector.load %arg4[%c0_4, %c0_5] : memref<96x32xbf16, #tpu.memory_space<vmem>>, vector<96x32xbf16>
    %cst = arith.constant dense<0.000000e+00> : vector<16x96xf32>
    %6 = tpu.matmul %4, %5, %cst {dimension_numbers = #tpu.dot_dimension_numbers<[1], [1], [0], [0], [0, 0, 1, 0], [], []>} : vector<16x32xbf16>, vector<96x32xbf16>, vector<16x96xf32> -> vector<16x96xf32>
    %7 = arith.addf %3, %6 : vector<16x96xf32>
    %c0_6 = arith.constant 0 : index
    %c0_7 = arith.constant 0 : index
    %8 = vector.load %arg7[%c0_6, %c0_7] : memref<16x96xf32, #tpu.memory_space<vmem>>, vector<16x96xf32>
    tpu.vector_store %arg7[%c0_6, %c0_7], %7 {strides = array<i32>} : memref<16x96xf32, #tpu.memory_space<vmem>>, vector<16x96xf32>,
    %c0_i32_8 = arith.constant 0 : i32
    %9 = arith.cmpi eq, %arg2, %c0_i32_8 : i32
    %10 = arith.extui %9 : i1 to i32
    %c0_i32_9 = arith.constant 0 : i32
    %11 = arith.cmpi ne, %10, %c0_i32_9 : i32
    scf.if %11 {
      %c0_10 = arith.constant 0 : index
      %c0_11 = arith.constant 0 : index
      %12 = vector.load %arg7[%c0_10, %c0_11] : memref<16x96xf32, #tpu.memory_space<vmem>>, vector<16x96xf32>
      %c0_12 = arith.constant 0 : index
      %c0_13 = arith.constant 0 : index
      %13 = vector.load %arg5[%c0_12, %c0_13] : memref<1x96xf32, #tpu.memory_space<vmem>>, vector<1x96xf32>
      %14 = vector.broadcast %13 : vector<1x96xf32> to vector<16x96xf32>
      %15 = arith.addf %12, %14 : vector<16x96xf32>
      %16 = arith.truncf %15 : vector<16x96xf32> to vector<16x96xbf16>
      %c0_14 = arith.constant 0 : index
      %c0_15 = arith.constant 0 : index
      %17 = vector.load %arg6[%c0_14, %c0_15] : memref<16x96xbf16, #tpu.memory_space<vmem>>, vector<16x96xbf16>
      tpu.vector_store %arg6[%c0_14, %c0_15], %16 {strides = array<i32>} : memref<16x96xbf16, #tpu.memory_space<vmem>>, vector<16x96xbf16>,
    } else {
    }
    return
  }
  func.func @transform_0(%arg0: i32, %arg1: i32, %arg2: i32) -> (i32, i32) {
    %c0_i32 = arith.constant 0 : i32
    return %arg0, %arg2 : i32, i32
  }
  func.func @transform_1(%arg0: i32, %arg1: i32, %arg2: i32) -> (i32, i32) {
    %c0_i32 = arith.constant 0 : i32
    return %arg1, %arg2 : i32, i32
  }
  func.func @transform_2(%arg0: i32, %arg1: i32, %arg2: i32) -> (i32, i32) {
    %c0_i32 = arith.constant 0 : i32
    %c0_i32_0 = arith.constant 0 : i32
    return %c0_i32, %arg1 : i32, i32
  }
  func.func @transform_3(%arg0: i32, %arg1: i32, %arg2: i32) -> (i32, i32) {
    %c0_i32 = arith.constant 0 : i32
    return %arg0, %arg1 : i32, i32
  }
}

module attributes {stable_mosaic.version = 11 : i64} {
  func.func @_linear_kernel(%arg0: i32, %arg1: i32, %arg2: i32, %arg3: memref<16x32xbf16, #tpu.memory_space<vmem>>, %arg4: memref<32x32xbf16, #tpu.memory_space<vmem>>, %arg5: memref<1x32xf32, #tpu.memory_space<vmem>>, %arg6: memref<16x32xf32, #tpu.memory_space<vmem>>, %arg7: memref<16x32xf32, #tpu.memory_space<vmem>>) attributes {dimension_semantics = [#tpu.dimension_semantics<parallel>, #tpu.dimension_semantics<parallel>, #tpu.dimension_semantics<arbitrary>], iteration_bounds = array<i64: 1, 1, 1>, scalar_prefetch = 0 : i64, scratch_operands = 1 : i64, tpu.core_type = #tpu.core_type<tc>, window_params = [{transform_indices = @transform_0, window_bounds = array<i64: 16, 32>}, {transform_indices = @transform_1, window_bounds = array<i64: 32, 32>}, {transform_indices = @transform_2, window_bounds = array<i64: 1, 32>}, {transform_indices = @transform_3, window_bounds = array<i64: 16, 32>}]} {
    %c0_i32 = arith.constant 0 : i32
    %0 = arith.cmpi eq, %arg2, %c0_i32 : i32
    %1 = arith.extui %0 : i1 to i32
    %c0_i32_0 = arith.constant 0 : i32
    %2 = arith.cmpi ne, %1, %c0_i32_0 : i32
    scf.if %2 {
      %cst_10 = arith.constant 0.000000e+00 : f32
      %12 = vector.broadcast %cst_10 : f32 to vector<16x32xf32>
      %c0_11 = arith.constant 0 : index
      %c0_12 = arith.constant 0 : index
      %13 = vector.load %arg7[%c0_11, %c0_12] : memref<16x32xf32, #tpu.memory_space<vmem>>, vector<16x32xf32>
      tpu.vector_store %arg7[%c0_11, %c0_12], %12 {strides = array<i32>} : memref<16x32xf32, #tpu.memory_space<vmem>>, vector<16x32xf32>,
    } else {
    }
    %c0 = arith.constant 0 : index
    %c0_1 = arith.constant 0 : index
    %3 = vector.load %arg7[%c0, %c0_1] : memref<16x32xf32, #tpu.memory_space<vmem>>, vector<16x32xf32>
    %c0_2 = arith.constant 0 : index
    %c0_3 = arith.constant 0 : index
    %4 = vector.load %arg3[%c0_2, %c0_3] : memref<16x32xbf16, #tpu.memory_space<vmem>>, vector<16x32xbf16>
    %c0_4 = arith.constant 0 : index
    %c0_5 = arith.constant 0 : index
    %5 = vector.load %arg4[%c0_4, %c0_5] : memref<32x32xbf16, #tpu.memory_space<vmem>>, vector<32x32xbf16>
    %cst = arith.constant dense<0.000000e+00> : vector<16x32xf32>
    %6 = tpu.matmul %4, %5, %cst {dimension_numbers = #tpu.dot_dimension_numbers<[1], [1], [0], [0], [0, 0, 1, 0], [], []>} : vector<16x32xbf16>, vector<32x32xbf16>, vector<16x32xf32> -> vector<16x32xf32>
    %7 = arith.addf %3, %6 : vector<16x32xf32>
    %c0_6 = arith.constant 0 : index
    %c0_7 = arith.constant 0 : index
    %8 = vector.load %arg7[%c0_6, %c0_7] : memref<16x32xf32, #tpu.memory_space<vmem>>, vector<16x32xf32>
    tpu.vector_store %arg7[%c0_6, %c0_7], %7 {strides = array<i32>} : memref<16x32xf32, #tpu.memory_space<vmem>>, vector<16x32xf32>,
    %c0_i32_8 = arith.constant 0 : i32
    %9 = arith.cmpi eq, %arg2, %c0_i32_8 : i32
    %10 = arith.extui %9 : i1 to i32
    %c0_i32_9 = arith.constant 0 : i32
    %11 = arith.cmpi ne, %10, %c0_i32_9 : i32
    scf.if %11 {
      %c0_10 = arith.constant 0 : index
      %c0_11 = arith.constant 0 : index
      %12 = vector.load %arg7[%c0_10, %c0_11] : memref<16x32xf32, #tpu.memory_space<vmem>>, vector<16x32xf32>
      %c0_12 = arith.constant 0 : index
      %c0_13 = arith.constant 0 : index
      %13 = vector.load %arg5[%c0_12, %c0_13] : memref<1x32xf32, #tpu.memory_space<vmem>>, vector<1x32xf32>
      %14 = vector.broadcast %13 : vector<1x32xf32> to vector<16x32xf32>
      %15 = arith.addf %12, %14 : vector<16x32xf32>
      %c0_14 = arith.constant 0 : index
      %c0_15 = arith.constant 0 : index
      %16 = vector.load %arg6[%c0_14, %c0_15] : memref<16x32xf32, #tpu.memory_space<vmem>>, vector<16x32xf32>
      tpu.vector_store %arg6[%c0_14, %c0_15], %15 {strides = array<i32>} : memref<16x32xf32, #tpu.memory_space<vmem>>, vector<16x32xf32>,
    } else {
    }
    return
  }
  func.func @transform_0(%arg0: i32, %arg1: i32, %arg2: i32) -> (i32, i32) {
    %c0_i32 = arith.constant 0 : i32
    return %arg0, %arg2 : i32, i32
  }
  func.func @transform_1(%arg0: i32, %arg1: i32, %arg2: i32) -> (i32, i32) {
    %c0_i32 = arith.constant 0 : i32
    return %arg1, %arg2 : i32, i32
  }
  func.func @transform_2(%arg0: i32, %arg1: i32, %arg2: i32) -> (i32, i32) {
    %c0_i32 = arith.constant 0 : i32
    %c0_i32_0 = arith.constant 0 : i32
    return %c0_i32, %arg1 : i32, i32
  }
  func.func @transform_3(%arg0: i32, %arg1: i32, %arg2: i32) -> (i32, i32) {
    %c0_i32 = arith.constant 0 : i32
    return %arg0, %arg1 : i32, i32
  }
}

module attributes {stable_mosaic.version = 11 : i64} {
  func.func @_flash_attn_kernel_nomask(%arg0: i32, %arg1: i32, %arg2: i32, %arg3: memref<8x8x8xbf16, #tpu.memory_space<vmem>>, %arg4: memref<8x8x8xbf16, #tpu.memory_space<vmem>>, %arg5: memref<8x8x8xbf16, #tpu.memory_space<vmem>>, %arg6: memref<8x64xbf16, #tpu.memory_space<vmem>>, %arg7: memref<8x8x1xf32, #tpu.memory_space<vmem>>, %arg8: memref<8x8x1xf32, #tpu.memory_space<vmem>>, %arg9: memref<8x8x8xf32, #tpu.memory_space<vmem>>) attributes {dimension_semantics = [#tpu.dimension_semantics<parallel>, #tpu.dimension_semantics<parallel>, #tpu.dimension_semantics<arbitrary>], iteration_bounds = array<i64: 1, 1, 1>, scalar_prefetch = 0 : i64, scratch_operands = 3 : i64, tpu.core_type = #tpu.core_type<tc>, window_params = [{transform_indices = @transform_0, window_bounds = array<i64: 8, 8, 8>}, {transform_indices = @transform_1, window_bounds = array<i64: 8, 8, 8>}, {transform_indices = @transform_2, window_bounds = array<i64: 8, 8, 8>}, {transform_indices = @transform_3, window_bounds = array<i64: 8, 64>}]} {
    %c0_i32 = arith.constant 0 : i32
    %0 = arith.cmpi eq, %arg2, %c0_i32 : i32
    %1 = arith.extui %0 : i1 to i32
    %c0_i32_0 = arith.constant 0 : i32
    %2 = arith.cmpi ne, %1, %c0_i32_0 : i32
    scf.if %2 {
      %cst_32 = arith.constant 0xFF800000 : f32
      %33 = vector.broadcast %cst_32 : f32 to vector<8x8x1xf32>
      %c0_33 = arith.constant 0 : index
      %c0_34 = arith.constant 0 : index
      %c0_35 = arith.constant 0 : index
      %34 = vector.load %arg7[%c0_33, %c0_34, %c0_35] : memref<8x8x1xf32, #tpu.memory_space<vmem>>, vector<8x8x1xf32>
      tpu.vector_store %arg7[%c0_33, %c0_34, %c0_35], %33 {strides = array<i32>} : memref<8x8x1xf32, #tpu.memory_space<vmem>>, vector<8x8x1xf32>,
      %cst_36 = arith.constant 0.000000e+00 : f32
      %35 = vector.broadcast %cst_36 : f32 to vector<8x8x1xf32>
      %c0_37 = arith.constant 0 : index
      %c0_38 = arith.constant 0 : index
      %c0_39 = arith.constant 0 : index
      %36 = vector.load %arg8[%c0_37, %c0_38, %c0_39] : memref<8x8x1xf32, #tpu.memory_space<vmem>>, vector<8x8x1xf32>
      tpu.vector_store %arg8[%c0_37, %c0_38, %c0_39], %35 {strides = array<i32>} : memref<8x8x1xf32, #tpu.memory_space<vmem>>, vector<8x8x1xf32>,
      %cst_40 = arith.constant 0.000000e+00 : f32
      %37 = vector.broadcast %cst_40 : f32 to vector<8x8x8xf32>
      %c0_41 = arith.constant 0 : index
      %c0_42 = arith.constant 0 : index
      %c0_43 = arith.constant 0 : index
      %38 = vector.load %arg9[%c0_41, %c0_42, %c0_43] : memref<8x8x8xf32, #tpu.memory_space<vmem>>, vector<8x8x8xf32>
      tpu.vector_store %arg9[%c0_41, %c0_42, %c0_43], %37 {strides = array<i32>} : memref<8x8x8xf32, #tpu.memory_space<vmem>>, vector<8x8x8xf32>,
    } else {
    }
    %c0 = arith.constant 0 : index
    %c0_1 = arith.constant 0 : index
    %c0_2 = arith.constant 0 : index
    %3 = vector.load %arg3[%c0, %c0_1, %c0_2] : memref<8x8x8xbf16, #tpu.memory_space<vmem>>, vector<8x8x8xbf16>
    %c0_3 = arith.constant 0 : index
    %c0_4 = arith.constant 0 : index
    %c0_5 = arith.constant 0 : index
    %4 = vector.load %arg4[%c0_3, %c0_4, %c0_5] : memref<8x8x8xbf16, #tpu.memory_space<vmem>>, vector<8x8x8xbf16>
    "tpu.trace_start"() <{level = 10 : i32, message = "hqd,hkd->hqk"}> : () -> ()
    %cst = arith.constant dense<0.000000e+00> : vector<8x8x8xf32>
    %5 = tpu.matmul %3, %4, %cst {dimension_numbers = #tpu.dot_dimension_numbers<[2], [2], [1], [1], [0, 0, 0, 1, 1, 1], [0], [0]>} : vector<8x8x8xbf16>, vector<8x8x8xbf16>, vector<8x8x8xf32> -> vector<8x8x8xf32>
    "tpu.trace_stop"() : () -> ()
    %c0_6 = arith.constant 0 : index
    %c0_7 = arith.constant 0 : index
    %c0_8 = arith.constant 0 : index
    %6 = vector.load %arg7[%c0_6, %c0_7, %c0_8] : memref<8x8x1xf32, #tpu.memory_space<vmem>>, vector<8x8x1xf32>
    %cst_9 = arith.constant dense<0xFF800000> : vector<8x8xf32>
    %7 = vector.multi_reduction <maximumf>, %5, %cst_9 [2] : vector<8x8x8xf32> to vector<8x8xf32>
    %8 = vector.shape_cast %7 : vector<8x8xf32> to vector<8x8x1xf32>
    %9 = arith.maximumf %6, %8 : vector<8x8x1xf32>
    %10 = arith.subf %6, %9 : vector<8x8x1xf32>
    %11 = math.exp %10 : vector<8x8x1xf32>
    %12 = vector.broadcast %9 : vector<8x8x1xf32> to vector<8x8x8xf32>
    %13 = arith.subf %5, %12 : vector<8x8x8xf32>
    %14 = math.exp %13 : vector<8x8x8xf32>
    %c0_10 = arith.constant 0 : index
    %c0_11 = arith.constant 0 : index
    %c0_12 = arith.constant 0 : index
    %15 = vector.load %arg8[%c0_10, %c0_11, %c0_12] : memref<8x8x1xf32, #tpu.memory_space<vmem>>, vector<8x8x1xf32>
    %16 = arith.mulf %11, %15 : vector<8x8x1xf32>
    %cst_13 = arith.constant dense<0.000000e+00> : vector<8x8xf32>
    %17 = vector.multi_reduction <add>, %14, %cst_13 [2] : vector<8x8x8xf32> to vector<8x8xf32>
    %18 = vector.shape_cast %17 : vector<8x8xf32> to vector<8x8x1xf32>
    %19 = arith.addf %16, %18 : vector<8x8x1xf32>
    %c0_14 = arith.constant 0 : index
    %c0_15 = arith.constant 0 : index
    %c0_16 = arith.constant 0 : index
    %20 = vector.load %arg8[%c0_14, %c0_15, %c0_16] : memref<8x8x1xf32, #tpu.memory_space<vmem>>, vector<8x8x1xf32>
    tpu.vector_store %arg8[%c0_14, %c0_15, %c0_16], %19 {strides = array<i32>} : memref<8x8x1xf32, #tpu.memory_space<vmem>>, vector<8x8x1xf32>,
    %c0_17 = arith.constant 0 : index
    %c0_18 = arith.constant 0 : index
    %c0_19 = arith.constant 0 : index
    %21 = vector.load %arg9[%c0_17, %c0_18, %c0_19] : memref<8x8x8xf32, #tpu.memory_space<vmem>>, vector<8x8x8xf32>
    %22 = vector.broadcast %11 : vector<8x8x1xf32> to vector<8x8x8xf32>
    %23 = arith.mulf %22, %21 : vector<8x8x8xf32>
    %24 = arith.truncf %14 : vector<8x8x8xf32> to vector<8x8x8xbf16>
    %c0_20 = arith.constant 0 : index
    %c0_21 = arith.constant 0 : index
    %c0_22 = arith.constant 0 : index
    %25 = vector.load %arg5[%c0_20, %c0_21, %c0_22] : memref<8x8x8xbf16, #tpu.memory_space<vmem>>, vector<8x8x8xbf16>
    "tpu.trace_start"() <{level = 10 : i32, message = "hqk,hkd->hqd"}> : () -> ()
    %cst_23 = arith.constant dense<0.000000e+00> : vector<8x8x8xf32>
    %26 = tpu.matmul %24, %25, %cst_23 {dimension_numbers = #tpu.dot_dimension_numbers<[2], [1], [1], [2], [0, 0, 0, 1, 1, 2], [0], [0]>} : vector<8x8x8xbf16>, vector<8x8x8xbf16>, vector<8x8x8xf32> -> vector<8x8x8xf32>
    "tpu.trace_stop"() : () -> ()
    %27 = arith.addf %23, %26 : vector<8x8x8xf32>
    %c0_24 = arith.constant 0 : index
    %c0_25 = arith.constant 0 : index
    %c0_26 = arith.constant 0 : index
    %28 = vector.load %arg9[%c0_24, %c0_25, %c0_26] : memref<8x8x8xf32, #tpu.memory_space<vmem>>, vector<8x8x8xf32>
    tpu.vector_store %arg9[%c0_24, %c0_25, %c0_26], %27 {strides = array<i32>} : memref<8x8x8xf32, #tpu.memory_space<vmem>>, vector<8x8x8xf32>,
    %c0_27 = arith.constant 0 : index
    %c0_28 = arith.constant 0 : index
    %c0_29 = arith.constant 0 : index
    %29 = vector.load %arg7[%c0_27, %c0_28, %c0_29] : memref<8x8x1xf32, #tpu.memory_space<vmem>>, vector<8x8x1xf32>
    tpu.vector_store %arg7[%c0_27, %c0_28, %c0_29], %9 {strides = array<i32>} : memref<8x8x1xf32, #tpu.memory_space<vmem>>, vector<8x8x1xf32>,
    %c0_i32_30 = arith.constant 0 : i32
    %30 = arith.cmpi eq, %arg2, %c0_i32_30 : i32
    %31 = arith.extui %30 : i1 to i32
    %c0_i32_31 = arith.constant 0 : i32
    %32 = arith.cmpi ne, %31, %c0_i32_31 : i32
    scf.if %32 {
      %c0_32 = arith.constant 0 : index
      %c0_33 = arith.constant 0 : index
      %c0_34 = arith.constant 0 : index
      %33 = vector.load %arg8[%c0_32, %c0_33, %c0_34] : memref<8x8x1xf32, #tpu.memory_space<vmem>>, vector<1x8x1xf32>
      %34 = vector.shape_cast %33 : vector<1x8x1xf32> to vector<8x1xf32>
      %cst_35 = arith.constant 1.000000e+00 : f32
      %35 = vector.broadcast %cst_35 : f32 to vector<8x1xf32>
      %36 = arith.divf %35, %34 : vector<8x1xf32>
      %c0_36 = arith.constant 0 : index
      %c0_37 = arith.constant 0 : index
      %c0_38 = arith.constant 0 : index
      %37 = vector.load %arg9[%c0_36, %c0_37, %c0_38] : memref<8x8x8xf32, #tpu.memory_space<vmem>>, vector<1x8x8xf32>
      %38 = vector.shape_cast %37 : vector<1x8x8xf32> to vector<8x8xf32>
      %39 = vector.broadcast %36 : vector<8x1xf32> to vector<8x8xf32>
      %40 = arith.mulf %38, %39 : vector<8x8xf32>
      %41 = arith.truncf %40 : vector<8x8xf32> to vector<8x8xbf16>
      %c0_39 = arith.constant 0 : index
      %c0_40 = arith.constant 0 : index
      %42 = vector.load %arg6[%c0_39, %c0_40] : memref<8x64xbf16, #tpu.memory_space<vmem>>, vector<8x8xbf16>
      tpu.vector_store %arg6[%c0_39, %c0_40], %41 {strides = array<i32>} : memref<8x64xbf16, #tpu.memory_space<vmem>>, vector<8x8xbf16>,
      %c1 = arith.constant 1 : index
      %c0_41 = arith.constant 0 : index
      %c0_42 = arith.constant 0 : index
      %43 = vector.load %arg8[%c1, %c0_41, %c0_42] : memref<8x8x1xf32, #tpu.memory_space<vmem>>, vector<1x8x1xf32>
      %44 = vector.shape_cast %43 : vector<1x8x1xf32> to vector<8x1xf32>
      %cst_43 = arith.constant 1.000000e+00 : f32
      %45 = vector.broadcast %cst_43 : f32 to vector<8x1xf32>
      %46 = arith.divf %45, %44 : vector<8x1xf32>
      %c1_44 = arith.constant 1 : index
      %c0_45 = arith.constant 0 : index
      %c0_46 = arith.constant 0 : index
      %47 = vector.load %arg9[%c1_44, %c0_45, %c0_46] : memref<8x8x8xf32, #tpu.memory_space<vmem>>, vector<1x8x8xf32>
      %48 = vector.shape_cast %47 : vector<1x8x8xf32> to vector<8x8xf32>
      %49 = vector.broadcast %46 : vector<8x1xf32> to vector<8x8xf32>
      %50 = arith.mulf %48, %49 : vector<8x8xf32>
      %51 = arith.truncf %50 : vector<8x8xf32> to vector<8x8xbf16>
      %c0_47 = arith.constant 0 : index
      %c8 = arith.constant 8 : index
      %52 = vector.load %arg6[%c0_47, %c8] : memref<8x64xbf16, #tpu.memory_space<vmem>>, vector<8x8xbf16>
      tpu.vector_store %arg6[%c0_47, %c8], %51 {strides = array<i32>} : memref<8x64xbf16, #tpu.memory_space<vmem>>, vector<8x8xbf16>,
      %c2 = arith.constant 2 : index
      %c0_48 = arith.constant 0 : index
      %c0_49 = arith.constant 0 : index
      %53 = vector.load %arg8[%c2, %c0_48, %c0_49] : memref<8x8x1xf32, #tpu.memory_space<vmem>>, vector<1x8x1xf32>
      %54 = vector.shape_cast %53 : vector<1x8x1xf32> to vector<8x1xf32>
      %cst_50 = arith.constant 1.000000e+00 : f32
      %55 = vector.broadcast %cst_50 : f32 to vector<8x1xf32>
      %56 = arith.divf %55, %54 : vector<8x1xf32>
      %c2_51 = arith.constant 2 : index
      %c0_52 = arith.constant 0 : index
      %c0_53 = arith.constant 0 : index
      %57 = vector.load %arg9[%c2_51, %c0_52, %c0_53] : memref<8x8x8xf32, #tpu.memory_space<vmem>>, vector<1x8x8xf32>
      %58 = vector.shape_cast %57 : vector<1x8x8xf32> to vector<8x8xf32>
      %59 = vector.broadcast %56 : vector<8x1xf32> to vector<8x8xf32>
      %60 = arith.mulf %58, %59 : vector<8x8xf32>
      %61 = arith.truncf %60 : vector<8x8xf32> to vector<8x8xbf16>
      %c0_54 = arith.constant 0 : index
      %c16 = arith.constant 16 : index
      %62 = vector.load %arg6[%c0_54, %c16] : memref<8x64xbf16, #tpu.memory_space<vmem>>, vector<8x8xbf16>
      tpu.vector_store %arg6[%c0_54, %c16], %61 {strides = array<i32>} : memref<8x64xbf16, #tpu.memory_space<vmem>>, vector<8x8xbf16>,
      %c3 = arith.constant 3 : index
      %c0_55 = arith.constant 0 : index
      %c0_56 = arith.constant 0 : index
      %63 = vector.load %arg8[%c3, %c0_55, %c0_56] : memref<8x8x1xf32, #tpu.memory_space<vmem>>, vector<1x8x1xf32>
      %64 = vector.shape_cast %63 : vector<1x8x1xf32> to vector<8x1xf32>
      %cst_57 = arith.constant 1.000000e+00 : f32
      %65 = vector.broadcast %cst_57 : f32 to vector<8x1xf32>
      %66 = arith.divf %65, %64 : vector<8x1xf32>
      %c3_58 = arith.constant 3 : index
      %c0_59 = arith.constant 0 : index
      %c0_60 = arith.constant 0 : index
      %67 = vector.load %arg9[%c3_58, %c0_59, %c0_60] : memref<8x8x8xf32, #tpu.memory_space<vmem>>, vector<1x8x8xf32>
      %68 = vector.shape_cast %67 : vector<1x8x8xf32> to vector<8x8xf32>
      %69 = vector.broadcast %66 : vector<8x1xf32> to vector<8x8xf32>
      %70 = arith.mulf %68, %69 : vector<8x8xf32>
      %71 = arith.truncf %70 : vector<8x8xf32> to vector<8x8xbf16>
      %c0_61 = arith.constant 0 : index
      %c24 = arith.constant 24 : index
      %72 = vector.load %arg6[%c0_61, %c24] : memref<8x64xbf16, #tpu.memory_space<vmem>>, vector<8x8xbf16>
      tpu.vector_store %arg6[%c0_61, %c24], %71 {strides = array<i32>} : memref<8x64xbf16, #tpu.memory_space<vmem>>, vector<8x8xbf16>,
      %c4 = arith.constant 4 : index
      %c0_62 = arith.constant 0 : index
      %c0_63 = arith.constant 0 : index
      %73 = vector.load %arg8[%c4, %c0_62, %c0_63] : memref<8x8x1xf32, #tpu.memory_space<vmem>>, vector<1x8x1xf32>
      %74 = vector.shape_cast %73 : vector<1x8x1xf32> to vector<8x1xf32>
      %cst_64 = arith.constant 1.000000e+00 : f32
      %75 = vector.broadcast %cst_64 : f32 to vector<8x1xf32>
      %76 = arith.divf %75, %74 : vector<8x1xf32>
      %c4_65 = arith.constant 4 : index
      %c0_66 = arith.constant 0 : index
      %c0_67 = arith.constant 0 : index
      %77 = vector.load %arg9[%c4_65, %c0_66, %c0_67] : memref<8x8x8xf32, #tpu.memory_space<vmem>>, vector<1x8x8xf32>
      %78 = vector.shape_cast %77 : vector<1x8x8xf32> to vector<8x8xf32>
      %79 = vector.broadcast %76 : vector<8x1xf32> to vector<8x8xf32>
      %80 = arith.mulf %78, %79 : vector<8x8xf32>
      %81 = arith.truncf %80 : vector<8x8xf32> to vector<8x8xbf16>
      %c0_68 = arith.constant 0 : index
      %c32 = arith.constant 32 : index
      %82 = vector.load %arg6[%c0_68, %c32] : memref<8x64xbf16, #tpu.memory_space<vmem>>, vector<8x8xbf16>
      tpu.vector_store %arg6[%c0_68, %c32], %81 {strides = array<i32>} : memref<8x64xbf16, #tpu.memory_space<vmem>>, vector<8x8xbf16>,
      %c5 = arith.constant 5 : index
      %c0_69 = arith.constant 0 : index
      %c0_70 = arith.constant 0 : index
      %83 = vector.load %arg8[%c5, %c0_69, %c0_70] : memref<8x8x1xf32, #tpu.memory_space<vmem>>, vector<1x8x1xf32>
      %84 = vector.shape_cast %83 : vector<1x8x1xf32> to vector<8x1xf32>
      %cst_71 = arith.constant 1.000000e+00 : f32
      %85 = vector.broadcast %cst_71 : f32 to vector<8x1xf32>
      %86 = arith.divf %85, %84 : vector<8x1xf32>
      %c5_72 = arith.constant 5 : index
      %c0_73 = arith.constant 0 : index
      %c0_74 = arith.constant 0 : index
      %87 = vector.load %arg9[%c5_72, %c0_73, %c0_74] : memref<8x8x8xf32, #tpu.memory_space<vmem>>, vector<1x8x8xf32>
      %88 = vector.shape_cast %87 : vector<1x8x8xf32> to vector<8x8xf32>
      %89 = vector.broadcast %86 : vector<8x1xf32> to vector<8x8xf32>
      %90 = arith.mulf %88, %89 : vector<8x8xf32>
      %91 = arith.truncf %90 : vector<8x8xf32> to vector<8x8xbf16>
      %c0_75 = arith.constant 0 : index
      %c40 = arith.constant 40 : index
      %92 = vector.load %arg6[%c0_75, %c40] : memref<8x64xbf16, #tpu.memory_space<vmem>>, vector<8x8xbf16>
      tpu.vector_store %arg6[%c0_75, %c40], %91 {strides = array<i32>} : memref<8x64xbf16, #tpu.memory_space<vmem>>, vector<8x8xbf16>,
      %c6 = arith.constant 6 : index
      %c0_76 = arith.constant 0 : index
      %c0_77 = arith.constant 0 : index
      %93 = vector.load %arg8[%c6, %c0_76, %c0_77] : memref<8x8x1xf32, #tpu.memory_space<vmem>>, vector<1x8x1xf32>
      %94 = vector.shape_cast %93 : vector<1x8x1xf32> to vector<8x1xf32>
      %cst_78 = arith.constant 1.000000e+00 : f32
      %95 = vector.broadcast %cst_78 : f32 to vector<8x1xf32>
      %96 = arith.divf %95, %94 : vector<8x1xf32>
      %c6_79 = arith.constant 6 : index
      %c0_80 = arith.constant 0 : index
      %c0_81 = arith.constant 0 : index
      %97 = vector.load %arg9[%c6_79, %c0_80, %c0_81] : memref<8x8x8xf32, #tpu.memory_space<vmem>>, vector<1x8x8xf32>
      %98 = vector.shape_cast %97 : vector<1x8x8xf32> to vector<8x8xf32>
      %99 = vector.broadcast %96 : vector<8x1xf32> to vector<8x8xf32>
      %100 = arith.mulf %98, %99 : vector<8x8xf32>
      %101 = arith.truncf %100 : vector<8x8xf32> to vector<8x8xbf16>
      %c0_82 = arith.constant 0 : index
      %c48 = arith.constant 48 : index
      %102 = vector.load %arg6[%c0_82, %c48] : memref<8x64xbf16, #tpu.memory_space<vmem>>, vector<8x8xbf16>
      tpu.vector_store %arg6[%c0_82, %c48], %101 {strides = array<i32>} : memref<8x64xbf16, #tpu.memory_space<vmem>>, vector<8x8xbf16>,
      %c7 = arith.constant 7 : index
      %c0_83 = arith.constant 0 : index
      %c0_84 = arith.constant 0 : index
      %103 = vector.load %arg8[%c7, %c0_83, %c0_84] : memref<8x8x1xf32, #tpu.memory_space<vmem>>, vector<1x8x1xf32>
      %104 = vector.shape_cast %103 : vector<1x8x1xf32> to vector<8x1xf32>
      %cst_85 = arith.constant 1.000000e+00 : f32
      %105 = vector.broadcast %cst_85 : f32 to vector<8x1xf32>
      %106 = arith.divf %105, %104 : vector<8x1xf32>
      %c7_86 = arith.constant 7 : index
      %c0_87 = arith.constant 0 : index
      %c0_88 = arith.constant 0 : index
      %107 = vector.load %arg9[%c7_86, %c0_87, %c0_88] : memref<8x8x8xf32, #tpu.memory_space<vmem>>, vector<1x8x8xf32>
      %108 = vector.shape_cast %107 : vector<1x8x8xf32> to vector<8x8xf32>
      %109 = vector.broadcast %106 : vector<8x1xf32> to vector<8x8xf32>
      %110 = arith.mulf %108, %109 : vector<8x8xf32>
      %111 = arith.truncf %110 : vector<8x8xf32> to vector<8x8xbf16>
      %c0_89 = arith.constant 0 : index
      %c56 = arith.constant 56 : index
      %112 = vector.load %arg6[%c0_89, %c56] : memref<8x64xbf16, #tpu.memory_space<vmem>>, vector<8x8xbf16>
      tpu.vector_store %arg6[%c0_89, %c56], %111 {strides = array<i32>} : memref<8x64xbf16, #tpu.memory_space<vmem>>, vector<8x8xbf16>,
    } else {
    }
    return
  }
  func.func @transform_0(%arg0: i32, %arg1: i32, %arg2: i32) -> (i32, i32, i32) {
    %c0_i32 = arith.constant 0 : i32
    %c0_i32_0 = arith.constant 0 : i32
    return %arg0, %arg1, %c0_i32 : i32, i32, i32
  }
  func.func @transform_1(%arg0: i32, %arg1: i32, %arg2: i32) -> (i32, i32, i32) {
    %c0_i32 = arith.constant 0 : i32
    %c0_i32_0 = arith.constant 0 : i32
    return %arg0, %arg2, %c0_i32 : i32, i32, i32
  }
  func.func @transform_2(%arg0: i32, %arg1: i32, %arg2: i32) -> (i32, i32, i32) {
    %c0_i32 = arith.constant 0 : i32
    %c0_i32_0 = arith.constant 0 : i32
    return %arg0, %arg2, %c0_i32 : i32, i32, i32
  }
  func.func @transform_3(%arg0: i32, %arg1: i32, %arg2: i32) -> (i32, i32) {
    %c0_i32 = arith.constant 0 : i32
    return %arg1, %arg0 : i32, i32
  }
}

</mosaic_0001>

<bundles_post_ra>
// kernel: attention_forward.5
= control target key start
LH: loop header
LB: loop body
LE: loop exit
PB: predicated region body
PF: predicated region fallthrough
CT: control target
= control target key end

     0   :  { %vm20_vm0 = vcmask 261120   ;;  %v179_v0 = vmov 0.0   ;;  %vm180_vm1 = vmmov 0   ;;  %s228_s0 = inlined_call_operand.vmem [shape: bf16[16,32], index: 0, kind: input, shape index: {}]   ;;  %s229_s1 = inlined_call_operand.vmem [shape: bf16[32,32], index: 1, kind: input, shape index: {}]   ;;  %s230_s2 = inlined_call_operand.vmem [shape: f32[1,32], index: 2, kind: input, shape index: {}]   ;;  %s231_s3 = inlined_call_operand.hbm [shape: f32[16,32], index: 3, kind: output, shape index: {}]  }
   0x1   :  { %141 = vmatprep.subr.bf16.mxu0 %v179_v0  ;;  %v154_v1 = vld [vmem:[%s229_s1 + $0x8] sm:$0xff]   ;;  %21 = vst.msk [vmem:[#allocation2] sm:$0xff] %vm20_vm0, %v179_v0  ;;  %22 = vst.msk [vmem:[#allocation2 + $0x8] sm:$0xff] %vm20_vm0, %v179_v0  ;;  %145 = vmatprep.mubr.msk.bf16.mxu0 %vm180_vm1, %v179_v0 }
   0x2   :  { %v54_v2 = vsel %vm20_vm0, %v154_v1, 0 }
   0x3   :  { %8 = vsyncpa [#allocation4], 0  ;;  %142 = vmatpush3.bf16.xpose.msra.mxu0 %v54_v2  ;;  %v155_v3 = vld [vmem:[%s229_s1] sm:$0xff]  }
   0x4   :  { %143 = vmatprep.subr.bf16.mxu0 %v179_v0  ;;  %v51_v4 = vsel %vm20_vm0, %v155_v3, 0  ;;  %v156_v5 = vld [vmem:[%s228_s0] sm:$0xff]   ;;  %s181_s0 = smov [#allocation3]  }
   0x5   :  { %v137_v14 = vld [vmem:[%s230_s2] ss:$0 sm:$0xff]  ;;  %s122_s19 = sshll.u32 %s181_s0, 4  ;;  %s123_s19 = int_to_ptr.vmem [resolvable:$true] %s122_s19 }
   0x6   :  { %s157_s20 = scalar_lea.vmem %s123_s19, 256  ;;  %p162_p1 = scmp.lt.s32.totalorder %s123_s19, %s123_s19 }
   0x7   :  { %p158_p0 = scmp.ne.s32.totalorder %s123_s19, %s157_s20  ;;  %p163_p2 = scmp.lt.s32.totalorder %s157_s20, %s157_s20 }
   0x8   :  { %v23_v6 = vld [vmem:[#allocation2] sm:$0xff]  ;;  %v24_v10 = vld [vmem:[#allocation2 + $0x8] sm:$0xff] }
   0x9   :  { %p164_p3 = por %p163_p2, %p162_p1 }
   0xb   :  { %144 = vmatpush3.bf16.xpose.msra.mxu0 %v51_v4  ;;  %p165_p4 = pnand %p164_p3, %p158_p0 }
  0x12   :  { %146 = vmatmul.mubr.msk.bf16.vlgmr.msra.gmra.mxu0 %vm20_vm0, %v156_v5 }
  0xd2   :  { %v90_v7 = vpop.f32.mrf.mxu0 }
  0xd3   :  { %v97_v8 = vadd.f32 %v90_v7, %v23_v6 }
  0xd4   :  { %v147_v9 = vpop.f32.mrf.mxu0 }
  0xd5   :  { %99 = vst.msk [vmem:[#allocation2] sm:$0xff] %vm20_vm0, %v97_v8 }
  0xd6   :  { %v93_v11 = vpop.f32.mrf.mxu0 }
  0xd7   :  { %v98_v12 = vadd.f32 %v93_v11, %v24_v10 }
  0xd8   :  { %v148_v13 = vpop.f32.mrf.mxu0 }
  0xd9   :  { %100 = vst.msk [vmem:[#allocation2 + $0x8] sm:$0xff] %vm20_vm0, %v98_v12 }
  0xdc   :  { %v104_v15 = vld [vmem:[#allocation2] sm:$0xff] }
  0xdd   :  { %v113_v16 = vadd.f32 %v137_v14, %v104_v15 }
  0xdf   :  { %115 = vst.msk [vmem:[#allocation3] sm:$0xff] %vm20_vm0, %v113_v16 }
  0xe0   :  { %v105_v17 = vld [vmem:[#allocation2 + $0x8] sm:$0xff] }
  0xe1   :  { %v114_v18 = vadd.f32 %v137_v14, %v105_v17 }
  0xe3   :  { %116 = vst.msk [vmem:[#allocation3 + $0x8] sm:$0xff] %vm20_vm0, %v114_v18 }
  0xe4   :  { %168 = shalt.err (!%p165_p4)
}
  0xe5   :  { %s182_s21 = smov 128   ;;  %s183_s2 = smov 8  }
  0xe6   :  { %128 = dma.vmem_to_hbm [thread:$0]  %s123_s19, 256, %s231_s3, [#allocation4], %s182_s21, %s182_s21, %s183_s2  }
  0xe7   :  { %177 = dma.done.wait [#allocation4], 256  }
  0xe8   :  { %178 = vsyncadd [#allocation4], 4294967040 }
  0xe9   :  { %132 = vsyncpa [#allocation4], 1 }

// kernel: attention_forward.3
= control target key start
LH: loop header
LB: loop body
LE: loop exit
PB: predicated region body
PF: predicated region fallthrough
CT: control target
= control target key end

     0   :  { %vm73_vm0 = vcmask 261120   ;;  %vm19_vm1 = vcmask 785408   ;;  %v215_v0 = vmov 0.0   ;;  %vm216_vm2 = vmmov 0   ;;  %s278_s1 = inlined_call_operand.vmem [shape: bf16[96,32], index: 1, kind: input, shape index: {}]   ;;  %s279_s0 = inlined_call_operand.vmem [shape: bf16[16,32], index: 0, kind: input, shape index: {}]   ;;  %s280_s2 = inlined_call_operand.vmem [shape: f32[1,96], index: 2, kind: input, shape index: {}]   ;;  %s281_s3 = inlined_call_operand.vmem [shape: bf16[16,96], index: 3, kind: output, shape index: {}]  }
   0x1   :  { %190 = vmatprep.subr.bf16.mxu0 %v215_v0  ;;  %v208_v1 = vld [vmem:[%s278_s1 + $0x28] sm:$0xff]   ;;  %202 = vmatprep.mubr.msk.bf16.mxu0 %vm216_vm2, %v215_v0  ;;  %20 = vst.msk [vmem:[#allocation2] sm:$0xff] %vm19_vm1, %v215_v0  ;;  %21 = vst.msk [vmem:[#allocation2 + $0x8] sm:$0xff] %vm19_vm1, %v215_v0  ;;  %v209_v3 = vld [vmem:[%s278_s1 + $0x20] sm:$0xff]   ;;  %vm163_vm3 = vcmask 781312  }
   0x2   :  { %v93_v2 = vsel %vm73_vm0, %v208_v1, 0  ;;  %v90_v4 = vsel %vm73_vm0, %v209_v3, 0  ;;  %v210_v5 = vld [vmem:[%s278_s1 + $0x18] sm:$0xff]   ;;  %v211_v7 = vld [vmem:[%s278_s1 + $0x10] sm:$0xff]   ;;  %v212_v9 = vld [vmem:[%s278_s1 + $0x8] sm:$0xff]  }
   0x3   :  { %191 = vmatpush3.bf16.xpose.msra.mxu0 %v93_v2  ;;  %v87_v6 = vsel %vm73_vm0, %v210_v5, 0  ;;  %v84_v8 = vsel %vm73_vm0, %v211_v7, 0  ;;  %v81_v10 = vsel %vm73_vm0, %v212_v9, 0  ;;  %v213_v11 = vld [vmem:[%s278_s1] sm:$0xff]  }
   0x4   :  { %192 = vmatprep.subr.bf16.mxu0 %v215_v0  ;;  %v78_v12 = vsel %vm73_vm0, %v213_v11, 0  ;;  %v214_v13 = vld [vmem:[%s279_s0] sm:$0xff]  }
   0x5   :  { %v178_v22 = vld [vmem:[%s280_s2] ss:$0 sm:$0xff] }
   0x8   :  { %v22_v14 = vld [vmem:[#allocation2] sm:$0xff]  ;;  %v23_v18 = vld [vmem:[#allocation2 + $0x8] sm:$0xff] }
   0xb   :  { %193 = vmatpush3.bf16.xpose.msra.mxu0 %v90_v4 }
   0xc   :  { %194 = vmatprep.subr.bf16.mxu0 %v215_v0 }
  0x13   :  { %195 = vmatpush3.bf16.xpose.msra.mxu0 %v87_v6 }
  0x14   :  { %196 = vmatprep.subr.bf16.mxu0 %v215_v0 }
  0x1b   :  { %197 = vmatpush3.bf16.xpose.msra.mxu0 %v84_v8 }
  0x1c   :  { %198 = vmatprep.subr.bf16.mxu0 %v215_v0 }
  0x23   :  { %199 = vmatpush3.bf16.xpose.msra.mxu0 %v81_v10 }
  0x24   :  { %200 = vmatprep.subr.bf16.mxu0 %v215_v0 }
  0x2b   :  { %201 = vmatpush3.bf16.xpose.msra.mxu0 %v78_v12 }
  0x32   :  { %203 = vmatmul.mubr.msk.bf16.vlgmr.msra.gmra.mxu0 %vm73_vm0, %v214_v13 }
  0xf2   :  { %v129_v15 = vpop.f32.mrf.mxu0 }
  0xf3   :  { %v136_v16 = vadd.f32 %v129_v15, %v22_v14 }
  0xf4   :  { %v204_v17 = vpop.f32.mrf.mxu0 }
  0xf5   :  { %139 = vst.msk [vmem:[#allocation2] sm:$0xff] %vm19_vm1, %v136_v16 }
  0xf6   :  { %v132_v19 = vpop.f32.mrf.mxu0 }
  0xf7   :  { %v137_v20 = vadd.f32 %v132_v19, %v23_v18 }
  0xf8   :  { %v205_v21 = vpop.f32.mrf.mxu0 }
  0xf9   :  { %140 = vst.msk [vmem:[#allocation2 + $0x8] sm:$0xff] %vm19_vm1, %v137_v20 }
  0xfc   :  { %v144_v23 = vld [vmem:[#allocation2] sm:$0xff] }
  0xfd   :  { %v153_v24 = vadd.f32 %v178_v22, %v144_v23 }
  0xff   :  { %v181_v25 = vpack.c.bf16 %v153_v24, %v153_v24 }
 0x100   :  { %v145_v26 = vld [vmem:[#allocation2 + $0x8] sm:$0xff] }
 0x101   :  { %164 = vst.msk [vmem:[%s281_s3] sm:$0xf] %vm163_vm3, %v181_v25  ;;  %v154_v27 = vadd.f32 %v178_v22, %v145_v26 }
 0x103   :  { %v182_v28 = vpack.c.bf16 %v154_v27, %v154_v27 }
 0x105   :  { %165 = vst.msk [vmem:[%s281_s3 + $0x4] sm:$0xf] %vm163_vm3, %v182_v28 }

// kernel: attention_forward.4
= control target key start
LH: loop header
LB: loop body
LE: loop exit
PB: predicated region body
PF: predicated region fallthrough
CT: control target
= control target key end

     0   :  { %vm36_vm0 = vcmask 64512   ;;  %v1466_v0 = vmov 0.0   ;;  %vm1467_vm1 = vmmov 0   ;;  %vm19_vm2 = vcmask 7168   ;;  %s1471_s4 = smov 16   ;;  %s1472_s5 = smov 24   ;;  %s1898_s1 = inlined_call_operand.vmem [shape: bf16[8,8,8], index: 1, kind: input, shape index: {}]   ;;  %s1899_s0 = inlined_call_operand.vmem [shape: bf16[8,8,8], index: 0, kind: input, shape index: {}]   ;;  %s1900_s2 = inlined_call_operand.vmem [shape: bf16[8,8,8], index: 2, kind: input, shape index: {}]   ;;  %s1901_s3 = inlined_call_operand.vmem [shape: bf16[8,64], index: 3, kind: output, shape index: {}]  }
   0x1   :  { %1309 = vmatprep.subr.bf16.mxu0 %v1466_v0  ;;  %1315 = vmatprep.subr.bf16.mxu1 %v1466_v0  ;;  %v53_v1 = vld [vmem:[%s1898_s1] sm:$0xf]  ;;  %37 = vst.msk [vmem:[#allocation4] sm:$0xff] %vm36_vm0, %v1466_v0  ;;  %38 = vst.msk [vmem:[#allocation4 + $0x8] sm:$0xff] %vm36_vm0, %v1466_v0  ;;  %v54_v2 = vld [vmem:[%s1898_s1 + $0x4] sm:$0xf] }
   0x2   :  { %39 = vst.msk [vmem:[#allocation4 + $0x10] sm:$0xff] %vm36_vm0, %v1466_v0  ;;  %40 = vst.msk [vmem:[#allocation4 + $0x18] sm:$0xff] %vm36_vm0, %v1466_v0  ;;  %v66_v3 = vsel %vm36_vm0, %v53_v1, 0  ;;  %v112_v4 = vsel %vm36_vm0, %v54_v2, 0  ;;  %1311 = vmatprep.mubr.msk.bf16.mxu0 %vm1467_vm1, %v1466_v0  ;;  %1317 = vmatprep.mubr.msk.bf16.mxu1 %vm1467_vm1, %v1466_v0  ;;  %v55_v5 = vld [vmem:[%s1898_s1 + $0x8] sm:$0xf] }
   0x3   :  { %41 = vst.msk [vmem:[#allocation4 + $0x20] sm:$0xff] %vm36_vm0, %v1466_v0  ;;  %42 = vst.msk [vmem:[#allocation4 + $0x28] sm:$0xff] %vm36_vm0, %v1466_v0  ;;  %1310 = vmatpush3.bf16.xpose.msra.mxu0 %v66_v3  ;;  %1316 = vmatpush3.bf16.xpose.msra.mxu1 %v112_v4  ;;  %v56_v6 = vld [vmem:[%s1898_s1 + $0xc] sm:$0xf]  ;;  %v45_v7 = vld [vmem:[%s1899_s0] sm:$0xf] }
   0x4   :  { %43 = vst.msk [vmem:[#allocation4 + $0x30] sm:$0xff] %vm36_vm0, %v1466_v0  ;;  %44 = vst.msk [vmem:[#allocation4 + $0x38] sm:$0xff] %vm36_vm0, %v1466_v0  ;;  %1321 = vmatprep.subr.bf16.mxu0 %v1466_v0  ;;  %1327 = vmatprep.subr.bf16.mxu1 %v1466_v0  ;;  %v46_v8 = vld [vmem:[%s1899_s0 + $0x4] sm:$0xf]  ;;  %v158_v9 = vsel %vm36_vm0, %v55_v5, 0  ;;  %v204_v10 = vsel %vm36_vm0, %v56_v6, 0 }
   0x5   :  { %v57_v11 = vld [vmem:[%s1898_s1 + $0x10] sm:$0xf]  ;;  %v58_v12 = vld [vmem:[%s1898_s1 + $0x14] sm:$0xf]  ;;  %v47_v13 = vld [vmem:[%s1899_s0 + $0x8] sm:$0xf] }
   0x6   :  { %v48_v14 = vld [vmem:[%s1899_s0 + $0xc] sm:$0xf]  ;;  %v250_v15 = vsel %vm36_vm0, %v57_v11, 0  ;;  %v296_v16 = vsel %vm36_vm0, %v58_v12, 0  ;;  %v59_v17 = vld [vmem:[%s1898_s1 + $0x18] sm:$0xf] }
   0x7   :  { %v60_v18 = vld [vmem:[%s1898_s1 + $0x1c] sm:$0xf]  ;;  %v49_v19 = vld [vmem:[%s1899_s0 + $0x10] sm:$0xf]  ;;  %v50_v20 = vld [vmem:[%s1899_s0 + $0x14] sm:$0xf] }
   0x8   :  { %v342_v21 = vsel %vm36_vm0, %v59_v17, 0  ;;  %v388_v22 = vsel %vm36_vm0, %v60_v18, 0  ;;  %v51_v23 = vld [vmem:[%s1899_s0 + $0x18] sm:$0xf]  ;;  %v52_v24 = vld [vmem:[%s1899_s0 + $0x1c] sm:$0xf] }
   0x9   :  { %v1468_v25 = vmov -inf   ;;  %28 = vst.msk [vmem:[#allocation3] sm:$0xff] %vm19_vm2, %v1466_v0  ;;  %29 = vst.msk [vmem:[#allocation3 + $0x8] sm:$0xff] %vm19_vm2, %v1466_v0  ;;  %v1469_v44 = vmov 0   ;;  %vm690_vm3 = vcmask 1043456   ;;  %s1473_s6 = smov 32  }
   0xa   :  { %1312 = vmatmul.mubr.msk.bf16.vlgmr.msra.gmra.mxu0 %vm36_vm0, %v45_v7  ;;  %1318 = vmatmul.mubr.msk.bf16.vlgmr.msra.gmra.mxu1 %vm36_vm0, %v46_v8  ;;  %20 = vst.msk [vmem:[#allocation2] sm:$0xff] %vm19_vm2, %v1468_v25  ;;  %21 = vst.msk [vmem:[#allocation2 + $0x8] sm:$0xff] %vm19_vm2, %v1468_v25  ;;  %s1474_s7 = smov 40   ;;  %s1475_s8 = smov 48   ;;  %vm1094_vm4 = vcmask 60416   ;;  %vm1115_vm5 = vcmask 126016  }
   0xb   :  { %1322 = vmatpush3.bf16.xpose.msra.mxu0 %v158_v9  ;;  %1328 = vmatpush3.bf16.xpose.msra.mxu1 %v204_v10  ;;  %22 = vst.msk [vmem:[#allocation2 + $0x10] sm:$0xff] %vm19_vm2, %v1468_v25  ;;  %23 = vst.msk [vmem:[#allocation2 + $0x18] sm:$0xff] %vm19_vm2, %v1468_v25  ;;  %s1476_s9 = smov 56   ;;  %vm1136_vm6 = vcmask 191616   ;;  %vm1157_vm7 = vcmask 257216   ;;  %vm1178_vm8 = vcmask 322816  }
   0xc   :  { %1323 = vmatprep.mubr.msk.bf16.mxu0 %vm1467_vm1, %v1466_v0  ;;  %1329 = vmatprep.mubr.msk.bf16.mxu1 %vm1467_vm1, %v1466_v0  ;;  %24 = vst.msk [vmem:[#allocation2 + $0x20] sm:$0xff] %vm19_vm2, %v1468_v25  ;;  %25 = vst.msk [vmem:[#allocation2 + $0x28] sm:$0xff] %vm19_vm2, %v1468_v25  ;;  %vm1199_vm9 = vcmask 388416   ;;  %vm1220_vm10 = vcmask 454016   ;;  %vm1241_vm11 = vcmask 519616  }
   0xd   :  { %1333 = vmatprep.subr.bf16.mxu0 %v1466_v0  ;;  %1339 = vmatprep.subr.bf16.mxu1 %v1466_v0  ;;  %26 = vst.msk [vmem:[#allocation2 + $0x30] sm:$0xff] %vm19_vm2, %v1468_v25  ;;  %27 = vst.msk [vmem:[#allocation2 + $0x38] sm:$0xff] %vm19_vm2, %v1468_v25 }
   0xe   :  { %30 = vst.msk [vmem:[#allocation3 + $0x10] sm:$0xff] %vm19_vm2, %v1466_v0  ;;  %31 = vst.msk [vmem:[#allocation3 + $0x18] sm:$0xff] %vm19_vm2, %v1466_v0  ;;  %1416 = vset.pattern.permute.xlu0 %v1469_v44  ;;  %1417 = vset.pattern.permute.xlu1 %v1469_v44  ;;  %v682_v44 = vld [vmem:[%s1900_s2 + $0xc] sm:$0xf] }
   0xf   :  { %32 = vst.msk [vmem:[#allocation3 + $0x20] sm:$0xff] %vm19_vm2, %v1466_v0  ;;  %33 = vst.msk [vmem:[#allocation3 + $0x28] sm:$0xff] %vm19_vm2, %v1466_v0 }
  0x10   :  { %34 = vst.msk [vmem:[#allocation3 + $0x30] sm:$0xff] %vm19_vm2, %v1466_v0  ;;  %35 = vst.msk [vmem:[#allocation3 + $0x38] sm:$0xff] %vm19_vm2, %v1466_v0 }
  0x11   :  { %v1663_v4 = vld [vmem:[#allocation2] sm:$0xff]  ;;  %v1668_v7 = vld [vmem:[#allocation2 + $0x8] sm:$0xff] }
  0x12   :  { %1324 = vmatmul.mubr.msk.bf16.vlgmr.msra.gmra.mxu0 %vm36_vm0, %v47_v13  ;;  %1330 = vmatmul.mubr.msk.bf16.vlgmr.msra.gmra.mxu1 %vm36_vm0, %v48_v14  ;;  %v1678_v11 = vld [vmem:[#allocation2 + $0x10] sm:$0xff] }
  0x13   :  { %1334 = vmatpush3.bf16.xpose.msra.mxu0 %v250_v15  ;;  %1340 = vmatpush3.bf16.xpose.msra.mxu1 %v296_v16  ;;  %v1688_v15 = vld [vmem:[#allocation2 + $0x18] sm:$0xff] }
  0x14   :  { %1335 = vmatprep.mubr.msk.bf16.mxu0 %vm1467_vm1, %v1466_v0  ;;  %1341 = vmatprep.mubr.msk.bf16.mxu1 %vm1467_vm1, %v1466_v0 }
  0x15   :  { %1345 = vmatprep.subr.bf16.mxu0 %v1466_v0  ;;  %1351 = vmatprep.subr.bf16.mxu1 %v1466_v0 }
  0x1a   :  { %1336 = vmatmul.mubr.msk.bf16.vlgmr.msra.gmra.mxu0 %vm36_vm0, %v49_v19  ;;  %1342 = vmatmul.mubr.msk.bf16.vlgmr.msra.gmra.mxu1 %vm36_vm0, %v50_v20  ;;  %v1698_v19 = vld [vmem:[#allocation2 + $0x20] sm:$0xff]  ;;  %v1700_v20 = vld [vmem:[#allocation2 + $0x28] sm:$0xff] }
  0x1b   :  { %1346 = vmatpush3.bf16.xpose.msra.mxu0 %v342_v21  ;;  %1352 = vmatpush3.bf16.xpose.msra.mxu1 %v388_v22  ;;  %v679_v21 = vld [vmem:[%s1900_s2] sm:$0xf] }
  0x1c   :  { %1347 = vmatprep.mubr.msk.bf16.mxu0 %vm1467_vm1, %v1466_v0  ;;  %1353 = vmatprep.mubr.msk.bf16.mxu1 %vm1467_vm1, %v1466_v0 }
  0x1d   :  { %1357 = vmatprep.subr.bf16.mxu0 %v1466_v0  ;;  %1363 = vmatprep.subr.bf16.mxu1 %v1466_v0 }
  0x22   :  { %1348 = vmatmul.mubr.msk.bf16.vlgmr.msra.gmra.mxu0 %vm36_vm0, %v51_v23  ;;  %1354 = vmatmul.mubr.msk.bf16.vlgmr.msra.gmra.mxu1 %vm36_vm0, %v52_v24  ;;  %v692_v23 = vsel %vm690_vm3, %v679_v21, 0 }
  0x23   :  { %1359 = vmatprep.mubr.msk.bf16.mxu0 %vm1467_vm1, %v1466_v0  ;;  %1365 = vmatprep.mubr.msk.bf16.mxu1 %vm1467_vm1, %v1466_v0 }
  0x24   :  { %1358 = vmatpush3.bf16.msra.mxu0 %v692_v23 }
  0x25   :  { %1369 = vmatprep.subr.bf16.mxu0 %v1466_v0 }
  0xca   :  { %v1631_v26 = vpop.f32.mrf.mxu0  ;;  %v1633_v27 = vpop.f32.mrf.mxu1 }
  0xcb   :  { %v438_v28 = vsel %vm36_vm0, %v1631_v26, -inf  ;;  %v441_v31 = vsel %vm36_vm0, %v1633_v27, -inf }
  0xcc   :  { %v1319_v29 = vpop.f32.mrf.mxu1  ;;  %439 = vmax.xlane.f32.xlu0 %v438_v28  ;;  %v1313_v30 = vpop.f32.mrf.mxu0 }
  0xcd   :  { %v680_v30 = vld [vmem:[%s1900_s2 + $0x4] sm:$0xf] }
  0xce   :  { %v105_v32 = vpop.f32.mrf.mxu0  ;;  %v151_v33 = vpop.f32.mrf.mxu1 }
  0xcf   :  { %v738_v33 = vsel %vm690_vm3, %v680_v30, 0 }
  0xd0   :  { %v1320_v34 = vpop.f32.mrf.mxu1  ;;  %442 = vmax.xlane.f32.xlu0 %v441_v31  ;;  %v1314_v35 = vpop.f32.mrf.mxu0  ;;  %1364 = vmatpush3.bf16.msra.mxu1 %v738_v33 }
  0xd1   :  { %1375 = vmatprep.subr.bf16.mxu1 %v1466_v0  ;;  %v1732_v34 = vld [vmem:[#allocation2 + $0x30] sm:$0xff]  ;;  %v1734_v35 = vld [vmem:[#allocation2 + $0x38] sm:$0xff] }
  0xd2   :  { %v1639_v36 = vpop.f32.mrf.mxu0  ;;  %v1641_v37 = vpop.f32.mrf.mxu1 }
  0xd3   :  { %v444_v38 = vsel %vm36_vm0, %v1639_v36, -inf  ;;  %v447_v41 = vsel %vm36_vm0, %v1641_v37, -inf }
  0xd4   :  { %v1331_v39 = vpop.f32.mrf.mxu1  ;;  %445 = vmax.xlane.f32.xlu1 %v444_v38  ;;  %v1325_v40 = vpop.f32.mrf.mxu0  ;;  %v681_v38 = vld [vmem:[%s1900_s2 + $0x8] sm:$0xf] }
  0xd5   :  { %v784_v39 = vsel %vm690_vm3, %v681_v38, 0 }
  0xd6   :  { %v197_v42 = vpop.f32.mrf.mxu0  ;;  %v243_v43 = vpop.f32.mrf.mxu1 }
  0xd8   :  { %v1332_v45 = vpop.f32.mrf.mxu1  ;;  %448 = vmax.xlane.f32.xlu1 %v447_v41  ;;  %v1326_v46 = vpop.f32.mrf.mxu0 }
  0xda   :  { %v1647_v47 = vpop.f32.mrf.mxu0  ;;  %v1649_v48 = vpop.f32.mrf.mxu1 }
  0xdb   :  { %v450_v49 = vsel %vm36_vm0, %v1647_v47, -inf  ;;  %v453_v50 = vsel %vm36_vm0, %v1649_v48, -inf }
  0xdc   :  { %v1343_v51 = vpop.f32.mrf.mxu1  ;;  %451 = vmax.xlane.f32.xlu0 %v450_v49  ;;  %v1337_v52 = vpop.f32.mrf.mxu0  ;;  %454 = vmax.xlane.f32.xlu1 %v453_v50  ;;  %v830_v49 = vsel %vm690_vm3, %v682_v44, 0  ;;  %v683_v50 = vld [vmem:[%s1900_s2 + $0x10] sm:$0xf] }
  0xdd   :  { %v876_v51 = vsel %vm690_vm3, %v683_v50, 0  ;;  %v684_v52 = vld [vmem:[%s1900_s2 + $0x14] sm:$0xf] }
  0xde   :  { %v289_v53 = vpop.f32.mrf.mxu0  ;;  %v335_v54 = vpop.f32.mrf.mxu1 }
  0xdf   :  { %v1769_v53 = vsel %vm690_vm3, %v684_v52, 0  ;;  %v685_v54 = vld [vmem:[%s1900_s2 + $0x18] sm:$0xf] }
  0xe0   :  { %v1344_v55 = vpop.f32.mrf.mxu1  ;;  %v1338_v56 = vpop.f32.mrf.mxu0 }
  0xe1   :  { %v1775_v55 = vsel %vm690_vm3, %v685_v54, 0  ;;  %v686_v56 = vld [vmem:[%s1900_s2 + $0x1c] sm:$0xf]  ;;  %s1470_s2 = smov 8  }
  0xe2   :  { %v1655_v57 = vpop.f32.mrf.mxu0  ;;  %v1657_v58 = vpop.f32.mrf.mxu1 }
  0xe3   :  { %v456_v59 = vsel %vm36_vm0, %v1655_v57, -inf  ;;  %v459_v60 = vsel %vm36_vm0, %v1657_v58, -inf }
  0xe4   :  { %v1355_v61 = vpop.f32.mrf.mxu1  ;;  %457 = vmax.xlane.f32.xlu0 %v456_v59  ;;  %v1349_v62 = vpop.f32.mrf.mxu0  ;;  %460 = vmax.xlane.f32.xlu1 %v459_v60  ;;  %v1781_v59 = vsel %vm690_vm3, %v686_v56, 0 }
  0xe6   :  { %v381_v63 = vpop.f32.mrf.mxu0  ;;  %v427_v1 = vpop.f32.mrf.mxu1 }
  0xe8   :  { %v1356_v2 = vpop.f32.mrf.mxu1  ;;  %v1350_v3 = vpop.f32.mrf.mxu0 }
 0x155   :  { %v440_v5 = vpop.xlane.xlu0 %439 }
 0x156   :  { %v1666_v6 = vmax.f32 %v1663_v4, %v440_v5 }
 0x158   :  { %v470_v8 = vsub.f32 %v1663_v4, %v1666_v6  ;;  %1072 = vst.msk [vmem:[#allocation2] sm:$0xff] %vm19_vm2, %v1666_v6  ;;  %496 = vperm.xlu0 %1416, %v1666_v6   ;;  %v563_v6 = vld [vmem:[#allocation3 + $0x28] sm:$0xff] }
 0x159   :  { %v443_v9 = vpop.xlane.xlu0 %442 }
 0x15a   :  { %v1676_v10 = vmax.f32 %v1668_v7, %v443_v9 }
 0x15c   :  { %v471_v12 = vsub.f32 %v1668_v7, %v1676_v10  ;;  %1073 = vst.msk [vmem:[#allocation2 + $0x8] sm:$0xff] %vm19_vm2, %v1676_v10  ;;  %501 = vperm.xlu1 %1417, %v1676_v10  }
 0x15d   :  { %v446_v13 = vpop.xlane.xlu1 %445 }
 0x15e   :  { %v1686_v14 = vmax.f32 %v1678_v11, %v446_v13 }
 0x160   :  { %v472_v16 = vsub.f32 %v1678_v11, %v1686_v14  ;;  %1074 = vst.msk [vmem:[#allocation2 + $0x10] sm:$0xff] %vm19_vm2, %v1686_v14  ;;  %506 = vperm.xlu1 %1417, %v1686_v14   ;;  %v480_v11 = vmul.f32 1.442695, %v471_v12 }
 0x161   :  { %v449_v17 = vpop.xlane.xlu1 %448 }
 0x162   :  { %v1696_v18 = vmax.f32 %v1688_v15, %v449_v17 }
 0x164   :  { %v473_v22 = vsub.f32 %v1688_v15, %v1696_v18  ;;  %1075 = vst.msk [vmem:[#allocation2 + $0x18] sm:$0xff] %vm19_vm2, %v1696_v18  ;;  %511 = vperm.xlu1 %1417, %v1696_v18  }
 0x165   :  { %v452_v24 = vpop.xlane.xlu0 %451  ;;  %v455_v25 = vpop.xlane.xlu1 %454 }
 0x166   :  { %v1712_v28 = vmax.f32 %v1698_v19, %v452_v24  ;;  %v1715_v29 = vmax.f32 %v1700_v20, %v455_v25 }
 0x168   :  { %v474_v31 = vsub.f32 %v1698_v19, %v1712_v28  ;;  %1076 = vst.msk [vmem:[#allocation2 + $0x20] sm:$0xff] %vm19_vm2, %v1712_v28  ;;  %516 = vperm.xlu1 %1417, %v1712_v28   ;;  %v475_v32 = vsub.f32 %v1700_v20, %v1715_v29  ;;  %1077 = vst.msk [vmem:[#allocation2 + $0x28] sm:$0xff] %vm19_vm2, %v1715_v29 }
 0x16a   :  { %v488_v14 = vmul.f32 1.442695, %v475_v32 }
 0x16c   :  { %521 = vperm.xlu1 %1417, %v1715_v29   ;;  %v559_v29 = vld [vmem:[#allocation3 + $0x8] sm:$0xff] }
 0x16d   :  { %v458_v40 = vpop.xlane.xlu0 %457  ;;  %v461_v41 = vpop.xlane.xlu1 %460 }
 0x16e   :  { %v1742_v42 = vmax.f32 %v1732_v34, %v458_v40  ;;  %v1745_v43 = vmax.f32 %v1734_v35, %v461_v41 }
 0x170   :  { %v476_v45 = vsub.f32 %v1732_v34, %v1742_v42  ;;  %1078 = vst.msk [vmem:[#allocation2 + $0x30] sm:$0xff] %vm19_vm2, %v1742_v42  ;;  %526 = vperm.xlu1 %1417, %v1742_v42   ;;  %v477_v46 = vsub.f32 %v1734_v35, %v1745_v43  ;;  %1079 = vst.msk [vmem:[#allocation2 + $0x38] sm:$0xff] %vm19_vm2, %v1745_v43  ;;  %v560_v34 = vld [vmem:[#allocation3 + $0x10] sm:$0xff]  ;;  %v478_v42 = vmul.f32 1.442695, %v470_v8 }
 0x172   :  { %v492_v15 = vmul.f32 1.442695, %v477_v46  ;;  %v490_v7 = vmul.f32 1.442695, %v476_v45  ;;  %v561_v46 = vld [vmem:[#allocation3 + $0x18] sm:$0xff] }
 0x174   :  { %531 = vperm.xlu1 %1417, %v1745_v43  }
 0x1d3   :  { %v497_v60 = vpop.permute.xlu0 %496 }
 0x1d4   :  { %v534_v61 = vsub.f32 %v1631_v26, %v497_v60 }
 0x1d6   :  { %v542_v62 = vmul.f32 1.442695, %v534_v61 }
 0x1d7   :  { %v502_v63 = vpop.permute.xlu1 %501 }
 0x1d8   :  { %1418 = vpow2.f32 %v542_v62  ;;  %v535_v1 = vsub.f32 %v1633_v27, %v502_v63 }
 0x1da   :  { %v544_v2 = vmul.f32 1.442695, %v535_v1 }
 0x1db   :  { %v507_v3 = vpop.permute.xlu1 %506 }
 0x1dc   :  { %1420 = vpow2.f32 %v544_v2  ;;  %v536_v5 = vsub.f32 %v1639_v36, %v507_v3 }
 0x1de   :  { %v546_v9 = vmul.f32 1.442695, %v536_v5  ;;  %v482_v5 = vmul.f32 1.442695, %v472_v16  ;;  %v486_v16 = vmul.f32 1.442695, %v474_v31 }
 0x1df   :  { %v512_v13 = vpop.permute.xlu1 %511 }
 0x1e0   :  { %1422 = vpow2.f32 %v546_v9  ;;  %v537_v17 = vsub.f32 %v1641_v37, %v512_v13 }
 0x1e2   :  { %v548_v21 = vmul.f32 1.442695, %v537_v17 }
 0x1e3   :  { %v517_v23 = vpop.permute.xlu1 %516 }
 0x1e4   :  { %1424 = vpow2.f32 %v548_v21  ;;  %v538_v26 = vsub.f32 %v1647_v47, %v517_v23 }
 0x1e5   :  { %v1788_v24 = vpop.eup %1418 }
 0x1e6   :  { %v550_v25 = vmul.f32 1.442695, %v538_v26  ;;  %v671_v27 = vpack.c.bf16 %v1788_v24, %v1788_v24  ;;  %v574_v13 = vsel %vm36_vm0, %v1788_v24, 0.0  ;;  %v562_v26 = vld [vmem:[#allocation3 + $0x20] sm:$0xff] }
 0x1e7   :  { %v522_v30 = vpop.permute.xlu1 %521 }
 0x1e8   :  { %1426 = vpow2.f32 %v550_v25  ;;  %v539_v36 = vsub.f32 %v1649_v48, %v522_v30  ;;  %1360 = vmatmul.mubr.msk.bf16.vlgmr.msra.gmra.mxu0 %vm36_vm0, %v671_v27 }
 0x1e9   :  { %v1421_v33 = vpop.eup %1420  ;;  %1370 = vmatpush3.bf16.msra.mxu0 %v784_v39  ;;  %1371 = vmatprep.mubr.msk.bf16.mxu0 %vm1467_vm1, %v1466_v0 }
 0x1ea   :  { %v552_v37 = vmul.f32 1.442695, %v539_v36  ;;  %v577_v47 = vsel %vm36_vm0, %v1421_v33, 0.0  ;;  %v672_v38 = vpack.c.bf16 %v1421_v33, %v1421_v33  ;;  %1381 = vmatprep.subr.bf16.mxu0 %v1466_v0 }
 0x1eb   :  { %578 = vadd.xlane.f32.xlu1 %v577_v47  ;;  %v527_v40 = vpop.permute.xlu1 %526 }
 0x1ec   :  { %1428 = vpow2.f32 %v552_v37  ;;  %v540_v41 = vsub.f32 %v1655_v57, %v527_v40  ;;  %1366 = vmatmul.mubr.msk.bf16.vlgmr.msra.gmra.mxu1 %vm36_vm0, %v672_v38  ;;  %v564_v37 = vld [vmem:[#allocation3 + $0x30] sm:$0xff] }
 0x1ed   :  { %v1423_v48 = vpop.eup %1422  ;;  %1376 = vmatpush3.bf16.msra.mxu1 %v830_v49  ;;  %1377 = vmatprep.mubr.msk.bf16.mxu1 %vm1467_vm1, %v1466_v0 }
 0x1ee   :  { %v554_v39 = vmul.f32 1.442695, %v540_v41  ;;  %v580_v44 = vsel %vm36_vm0, %v1423_v48, 0.0  ;;  %v673_v50 = vpack.c.bf16 %v1423_v48, %v1423_v48  ;;  %1387 = vmatprep.subr.bf16.mxu1 %v1466_v0 }
 0x1ef   :  { %581 = vadd.xlane.f32.xlu0 %v580_v44  ;;  %v532_v52 = vpop.permute.xlu1 %531  ;;  %v565_v44 = vld [vmem:[#allocation3 + $0x38] sm:$0xff] }
 0x1f0   :  { %1430 = vpow2.f32 %v554_v39  ;;  %v541_v54 = vsub.f32 %v1657_v58, %v532_v52  ;;  %1372 = vmatmul.mubr.msk.bf16.vlgmr.msra.gmra.mxu0 %vm36_vm0, %v673_v50  ;;  %v558_v39 = vld [vmem:[#allocation3] sm:$0xff] }
 0x1f1   :  { %v1425_v57 = vpop.eup %1424  ;;  %1382 = vmatpush3.bf16.msra.mxu0 %v876_v51  ;;  %1383 = vmatprep.mubr.msk.bf16.mxu0 %vm1467_vm1, %v1466_v0 }
 0x1f2   :  { %v556_v49 = vmul.f32 1.442695, %v541_v54  ;;  %v583_v56 = vsel %vm36_vm0, %v1425_v57, 0.0  ;;  %v674_v60 = vpack.c.bf16 %v1425_v57, %v1425_v57  ;;  %1393 = vmatprep.subr.bf16.mxu0 %v1466_v0 }
 0x1f3   :  { %584 = vadd.xlane.f32.xlu0 %v583_v56 }
 0x1f4   :  { %1432 = vpow2.f32 %v556_v49  ;;  %1378 = vmatmul.mubr.msk.bf16.vlgmr.msra.gmra.mxu1 %vm36_vm0, %v674_v60 }
 0x1f5   :  { %v1427_v61 = vpop.eup %1426  ;;  %1388 = vmatpush3.bf16.msra.mxu1 %v1769_v53  ;;  %1389 = vmatprep.mubr.msk.bf16.mxu1 %vm1467_vm1, %v1466_v0  ;;  %1434 = vpow2.f32 %v482_v5 }
 0x1f6   :  { %v586_v58 = vsel %vm36_vm0, %v1427_v61, 0.0  ;;  %v675_v51 = vpack.c.bf16 %v1427_v61, %v1427_v61  ;;  %1399 = vmatprep.subr.bf16.mxu1 %v1466_v0 }
 0x1f7   :  { %587 = vadd.xlane.f32.xlu1 %v586_v58 }
 0x1f8   :  { %1384 = vmatmul.mubr.msk.bf16.vlgmr.msra.gmra.mxu0 %vm36_vm0, %v675_v51 }
 0x1f9   :  { %v1429_v62 = vpop.eup %1428  ;;  %1394 = vmatpush3.bf16.msra.mxu0 %v1775_v55  ;;  %1395 = vmatprep.mubr.msk.bf16.mxu0 %vm1467_vm1, %v1466_v0 }
 0x1fa   :  { %v589_v63 = vsel %vm36_vm0, %v1429_v62, 0.0  ;;  %v676_v53 = vpack.c.bf16 %v1429_v62, %v1429_v62 }
 0x1fb   :  { %590 = vadd.xlane.f32.xlu0 %v589_v63 }
 0x1fc   :  { %1390 = vmatmul.mubr.msk.bf16.vlgmr.msra.gmra.mxu1 %vm36_vm0, %v676_v53 }
 0x1fd   :  { %v1431_v1 = vpop.eup %1430  ;;  %1400 = vmatpush3.bf16.msra.mxu1 %v1781_v59  ;;  %1401 = vmatprep.mubr.msk.bf16.mxu1 %vm1467_vm1, %v1466_v0  ;;  %v484_v0 = vmul.f32 1.442695, %v473_v22 }
 0x1fe   :  { %v592_v2 = vsel %vm36_vm0, %v1431_v1, 0.0  ;;  %v677_v3 = vpack.c.bf16 %v1431_v1, %v1431_v1 }
 0x1ff   :  { %593 = vadd.xlane.f32.xlu1 %v592_v2  ;;  %1436 = vpow2.f32 %v484_v0 }
 0x200   :  { %1396 = vmatmul.mubr.msk.bf16.vlgmr.msra.gmra.mxu0 %vm36_vm0, %v677_v3  ;;  %1438 = vpow2.f32 %v480_v11 }
 0x201   :  { %v1433_v55 = vpop.eup %1432  ;;  %1440 = vpow2.f32 %v488_v14 }
 0x202   :  { %v595_v9 = vsel %vm36_vm0, %v1433_v55, 0.0  ;;  %v678_v59 = vpack.c.bf16 %v1433_v55, %v1433_v55  ;;  %1442 = vpow2.f32 %v486_v16  ;;  %v1435_v10 = vpop.eup %1434 }
 0x203   :  { %596 = vadd.xlane.f32.xlu0 %v595_v9  ;;  %575 = vadd.xlane.f32.xlu1 %v574_v13  ;;  %1444 = vpow2.f32 %v492_v15  ;;  %v568_v43 = vmul.f32 %v1435_v10, %v560_v34 }
 0x204   :  { %1402 = vmatmul.mubr.msk.bf16.vlgmr.msra.gmra.mxu1 %vm36_vm0, %v678_v59  ;;  %1446 = vpow2.f32 %v490_v7  ;;  %v616_v59 = vld [vmem:[#allocation4 + $0x8] sm:$0xff]  ;;  %v617_v7 = vld [vmem:[#allocation4 + $0x10] sm:$0xff] }
 0x205   :  { %1448 = vpow2.f32 %v478_v42 }
 0x20c   :  { %v1437_v12 = vpop.eup %1436 }
 0x20d   :  { %v1439_v18 = vpop.eup %1438  ;;  %v569_v21 = vmul.f32 %v1437_v12, %v561_v46  ;;  %v619_v46 = vld [vmem:[#allocation4 + $0x20] sm:$0xff] }
 0x20e   :  { %v1441_v19 = vpop.eup %1440  ;;  %v567_v31 = vmul.f32 %v1439_v18, %v559_v29  ;;  %v618_v29 = vld [vmem:[#allocation4 + $0x18] sm:$0xff] }
 0x20f   :  { %v1443_v20 = vpop.eup %1442  ;;  %v571_v36 = vmul.f32 %v1441_v19, %v563_v6 }
 0x210   :  { %v1445_v22 = vpop.eup %1444  ;;  %v570_v27 = vmul.f32 %v1443_v20, %v562_v26 }
 0x211   :  { %v1447_v28 = vpop.eup %1446  ;;  %v573_v57 = vmul.f32 %v1445_v22, %v565_v44 }
 0x212   :  { %v572_v40 = vmul.f32 %v1447_v28, %v564_v37  ;;  %v1449_v41 = vpop.eup %1448 }
 0x213   :  { %v566_v54 = vmul.f32 %v1449_v41, %v558_v39 }
 0x214   :  { %635 = vperm.xlu1 %1417, %v1435_v10  }
 0x218   :  { %640 = vperm.xlu1 %1417, %v1437_v12  }
 0x219   :  { %630 = vperm.xlu0 %1416, %v1439_v18  }
 0x21c   :  { %650 = vperm.xlu1 %1417, %v1441_v19  }
 0x21d   :  { %645 = vperm.xlu0 %1416, %v1443_v20  }
 0x220   :  { %660 = vperm.xlu1 %1417, %v1445_v22  }
 0x221   :  { %655 = vperm.xlu0 %1416, %v1447_v28  }
 0x274   :  { %v579_v32 = vpop.xlane.xlu1 %578 }
 0x275   :  { %v599_v35 = vadd.f32 %v579_v32, %v567_v31 }
 0x277   :  { %608 = vst.msk [vmem:[#allocation3 + $0x8] sm:$0xff] %vm19_vm2, %v599_v35 }
 0x278   :  { %v582_v45 = vpop.xlane.xlu0 %581 }
 0x279   :  { %v600_v17 = vadd.f32 %v582_v45, %v568_v43 }
 0x27b   :  { %609 = vst.msk [vmem:[#allocation3 + $0x10] sm:$0xff] %vm19_vm2, %v600_v17 }
 0x27c   :  { %v585_v23 = vpop.xlane.xlu0 %584 }
 0x27d   :  { %v601_v24 = vadd.f32 %v585_v23, %v569_v21 }
 0x27e   :  { %v1097_v25 = vld [vmem:[#allocation3 + $0x8] sm:$0xff] }
 0x27f   :  { %610 = vst.msk [vmem:[#allocation3 + $0x18] sm:$0xff] %vm19_vm2, %v601_v24  ;;  %1450 = vrcp.f32 %v1097_v25 }
 0x280   :  { %v588_v4 = vpop.xlane.xlu1 %587 }
 0x281   :  { %v602_v8 = vadd.f32 %v588_v4, %v570_v27  ;;  %v620_v4 = vld [vmem:[#allocation4 + $0x28] sm:$0xff] }
 0x282   :  { %v1118_v30 = vld [vmem:[#allocation3 + $0x10] sm:$0xff] }
 0x283   :  { %611 = vst.msk [vmem:[#allocation3 + $0x20] sm:$0xff] %vm19_vm2, %v602_v8  ;;  %1452 = vrcp.f32 %v1118_v30 }
 0x284   :  { %v591_v33 = vpop.xlane.xlu0 %590 }
 0x285   :  { %v603_v47 = vadd.f32 %v591_v33, %v571_v36 }
 0x286   :  { %v1139_v38 = vld [vmem:[#allocation3 + $0x18] sm:$0xff] }
 0x287   :  { %612 = vst.msk [vmem:[#allocation3 + $0x28] sm:$0xff] %vm19_vm2, %v603_v47  ;;  %1454 = vrcp.f32 %v1139_v38  ;;  %v621_v38 = vld [vmem:[#allocation4 + $0x30] sm:$0xff] }
 0x288   :  { %v594_v48 = vpop.xlane.xlu1 %593 }
 0x289   :  { %v604_v50 = vadd.f32 %v594_v48, %v572_v40 }
 0x28a   :  { %v1160_v52 = vld [vmem:[#allocation3 + $0x20] sm:$0xff] }
 0x28b   :  { %613 = vst.msk [vmem:[#allocation3 + $0x30] sm:$0xff] %vm19_vm2, %v604_v50  ;;  %1456 = vrcp.f32 %v1160_v52 }
 0x28c   :  { %v1451_v49 = vpop.eup %1450  ;;  %v576_v56 = vpop.xlane.xlu1 %575 }
 0x28d   :  { %v597_v60 = vpop.xlane.xlu0 %596  ;;  %v598_v61 = vadd.f32 %v576_v56, %v566_v54  ;;  %1104 = vperm.xlu0 %1416, %v1451_v49   ;;  %v622_v54 = vld [vmem:[#allocation4 + $0x38] sm:$0xff] }
 0x28e   :  { %v605_v58 = vadd.f32 %v597_v60, %v573_v57  ;;  %v1181_v51 = vld [vmem:[#allocation3 + $0x28] sm:$0xff] }
 0x28f   :  { %607 = vst.msk [vmem:[#allocation3] sm:$0xff] %vm19_vm2, %v598_v61  ;;  %1458 = vrcp.f32 %v1181_v51 }
 0x290   :  { %614 = vst.msk [vmem:[#allocation3 + $0x38] sm:$0xff] %vm19_vm2, %v605_v58  ;;  %v1453_v62 = vpop.eup %1452  ;;  %v636_v14 = vpop.permute.xlu1 %635 }
 0x291   :  { %1125 = vperm.xlu1 %1417, %v1453_v62   ;;  %v665_v22 = vmul.f32 %v636_v14, %v617_v7 }
 0x292   :  { %v1202_v63 = vld [vmem:[#allocation3 + $0x30] sm:$0xff] }
 0x293   :  { %1460 = vrcp.f32 %v1202_v63 }
 0x294   :  { %v1455_v53 = vpop.eup %1454  ;;  %v631_v0 = vpop.permute.xlu0 %630 }
 0x295   :  { %1146 = vperm.xlu0 %1416, %v1455_v53   ;;  %v664_v15 = vmul.f32 %v631_v0, %v616_v59  ;;  %v641_v28 = vpop.permute.xlu1 %640 }
 0x296   :  { %v1083_v3 = vld [vmem:[#allocation3] sm:$0xff]  ;;  %v666_v43 = vmul.f32 %v641_v28, %v618_v29 }
 0x297   :  { %v1223_v1 = vld [vmem:[#allocation3 + $0x38] sm:$0xff] }
 0x298   :  { %1462 = vrcp.f32 %v1223_v1  ;;  %v1457_v2 = vpop.eup %1456  ;;  %v646_v45 = vpop.permute.xlu0 %645 }
 0x299   :  { %1167 = vperm.xlu1 %1417, %v1457_v2   ;;  %1464 = vrcp.f32 %v1083_v3  ;;  %v651_v25 = vpop.permute.xlu1 %650  ;;  %v667_v27 = vmul.f32 %v646_v45, %v619_v46 }
 0x29a   :  { %v668_v37 = vmul.f32 %v651_v25, %v620_v4 }
 0x29c   :  { %v1459_v55 = vpop.eup %1458  ;;  %v656_v47 = vpop.permute.xlu0 %655 }
 0x29d   :  { %1188 = vperm.xlu0 %1416, %v1459_v55   ;;  %v661_v50 = vpop.permute.xlu1 %660  ;;  %v669_v52 = vmul.f32 %v656_v47, %v621_v38 }
 0x29e   :  { %v670_v58 = vmul.f32 %v661_v50, %v622_v54 }
 0x2a0   :  { %v1461_v5 = vpop.eup %1460 }
 0x2a1   :  { %1209 = vperm.xlu1 %1417, %v1461_v5  }
 0x2a5   :  { %v1463_v9 = vpop.eup %1462  ;;  %625 = vperm.xlu1 %1417, %v1449_v41  }
 0x2a6   :  { %1230 = vperm.xlu0 %1416, %v1463_v9   ;;  %v1465_v13 = vpop.eup %1464 }
 0x2a8   :  { %v1863_v11 = vpop.f32.mrf.mxu0 }
 0x2aa   :  { %1089 = vperm.xlu0 %1416, %v1465_v13   ;;  %v1361_v16 = vpop.f32.mrf.mxu0 }
 0x2ac   :  { %v731_v10 = vpop.f32.mrf.mxu0  ;;  %v774_v12 = vpop.f32.mrf.mxu1 }
 0x2ad   :  { %v1057_v18 = vadd.f32 %v774_v12, %v664_v15 }
 0x2ae   :  { %v1362_v19 = vpop.f32.mrf.mxu0  ;;  %v1367_v20 = vpop.f32.mrf.mxu1 }
 0x2af   :  { %1065 = vst.msk [vmem:[#allocation4 + $0x8] sm:$0xff] %vm36_vm0, %v1057_v18 }
 0x2b0   :  { %v777_v31 = vpop.f32.mrf.mxu1  ;;  %v820_v32 = vpop.f32.mrf.mxu0 }
 0x2b1   :  { %v1058_v34 = vadd.f32 %v820_v32, %v665_v22 }
 0x2b2   :  { %v1368_v35 = vpop.f32.mrf.mxu1  ;;  %v1373_v42 = vpop.f32.mrf.mxu0 }
 0x2b3   :  { %1066 = vst.msk [vmem:[#allocation4 + $0x10] sm:$0xff] %vm36_vm0, %v1058_v34 }
 0x2b4   :  { %v823_v17 = vpop.f32.mrf.mxu0  ;;  %v866_v21 = vpop.f32.mrf.mxu1 }
 0x2b5   :  { %v1059_v23 = vadd.f32 %v866_v21, %v666_v43  ;;  %v615_v43 = vld [vmem:[#allocation4] sm:$0xff] }
 0x2b6   :  { %v1374_v26 = vpop.f32.mrf.mxu0  ;;  %v1379_v24 = vpop.f32.mrf.mxu1  ;;  %v1101_v55 = vld [vmem:[#allocation4 + $0x8] sm:$0xff] }
 0x2b7   :  { %1067 = vst.msk [vmem:[#allocation4 + $0x18] sm:$0xff] %vm36_vm0, %v1059_v23 }
 0x2b8   :  { %v869_v6 = vpop.f32.mrf.mxu1  ;;  %v912_v8 = vpop.f32.mrf.mxu0 }
 0x2b9   :  { %v1060_v30 = vadd.f32 %v912_v8, %v667_v27 }
 0x2ba   :  { %v1380_v36 = vpop.f32.mrf.mxu1  ;;  %v1385_v33 = vpop.f32.mrf.mxu0  ;;  %v1122_v0 = vld [vmem:[#allocation4 + $0x10] sm:$0xff] }
 0x2bb   :  { %1068 = vst.msk [vmem:[#allocation4 + $0x20] sm:$0xff] %vm36_vm0, %v1060_v30 }
 0x2bc   :  { %v915_v40 = vpop.f32.mrf.mxu0  ;;  %v958_v41 = vpop.f32.mrf.mxu1 }
 0x2bd   :  { %v1061_v48 = vadd.f32 %v958_v41, %v668_v37 }
 0x2be   :  { %v1386_v39 = vpop.f32.mrf.mxu0  ;;  %v1391_v44 = vpop.f32.mrf.mxu1  ;;  %v1143_v15 = vld [vmem:[#allocation4 + $0x18] sm:$0xff] }
 0x2bf   :  { %1069 = vst.msk [vmem:[#allocation4 + $0x28] sm:$0xff] %vm36_vm0, %v1061_v48 }
 0x2c0   :  { %v961_v57 = vpop.f32.mrf.mxu1  ;;  %v1004_v49 = vpop.f32.mrf.mxu0 }
 0x2c1   :  { %v1062_v56 = vadd.f32 %v1004_v49, %v669_v52 }
 0x2c2   :  { %v1392_v60 = vpop.f32.mrf.mxu1  ;;  %v1397_v61 = vpop.f32.mrf.mxu0  ;;  %v1164_v19 = vld [vmem:[#allocation4 + $0x20] sm:$0xff] }
 0x2c3   :  { %1070 = vst.msk [vmem:[#allocation4 + $0x30] sm:$0xff] %vm36_vm0, %v1062_v56 }
 0x2c4   :  { %v1007_v51 = vpop.f32.mrf.mxu0  ;;  %v1050_v62 = vpop.f32.mrf.mxu1 }
 0x2c5   :  { %v1063_v63 = vadd.f32 %v1050_v62, %v670_v58 }
 0x2c6   :  { %v1398_v53 = vpop.f32.mrf.mxu0  ;;  %v1403_v1 = vpop.f32.mrf.mxu1  ;;  %v1185_v28 = vld [vmem:[#allocation4 + $0x28] sm:$0xff] }
 0x2c7   :  { %1071 = vst.msk [vmem:[#allocation4 + $0x38] sm:$0xff] %vm36_vm0, %v1063_v63 }
 0x2c8   :  { %v1053_v2 = vpop.f32.mrf.mxu1 }
 0x2ca   :  { %v1404_v3 = vpop.f32.mrf.mxu1  ;;  %v1206_v35 = vld [vmem:[#allocation4 + $0x30] sm:$0xff] }
 0x2ce   :  { %v1227_v17 = vld [vmem:[#allocation4 + $0x38] sm:$0xff] }
 0x308   :  { %v1105_v5 = vpop.permute.xlu0 %1104 }
 0x309   :  { %v1107_v9 = vmul.f32 %v1105_v5, %v1101_v55 }
 0x30b   :  { %v1270_v13 = vpack.c.bf16 %v1107_v9, %v1107_v9 }
 0x30c   :  { %v1126_v59 = vpop.permute.xlu1 %1125 }
 0x30d   :  { %v1128_v14 = vmul.f32 %v1126_v59, %v1122_v0  ;;  %1112 = vrot.lane.b32.xlu1 %v1270_v13, %s1470_s2 }
 0x30f   :  { %v1271_v16 = vpack.c.bf16 %v1128_v14, %v1128_v14 }
 0x310   :  { %v1147_v7 = vpop.permute.xlu0 %1146 }
 0x311   :  { %v1149_v10 = vmul.f32 %v1147_v7, %v1143_v15  ;;  %1133 = vrot.lane.b32.xlu0 %v1271_v16, %s1471_s4 }
 0x313   :  { %v1272_v12 = vpack.c.bf16 %v1149_v10, %v1149_v10 }
 0x314   :  { %v1168_v18 = vpop.permute.xlu1 %1167 }
 0x315   :  { %v1170_v20 = vmul.f32 %v1168_v18, %v1164_v19  ;;  %1154 = vrot.lane.b32.xlu1 %v1272_v12, %s1472_s5 }
 0x317   :  { %v1273_v22 = vpack.c.bf16 %v1170_v20, %v1170_v20 }
 0x318   :  { %v1189_v29 = vpop.permute.xlu0 %1188 }
 0x319   :  { %v1191_v31 = vmul.f32 %v1189_v29, %v1185_v28  ;;  %1175 = vrot.lane.b32.xlu0 %v1273_v22, %s1473_s6 }
 0x31b   :  { %v1274_v32 = vpack.c.bf16 %v1191_v31, %v1191_v31 }
 0x31c   :  { %v1210_v34 = vpop.permute.xlu1 %1209 }
 0x31d   :  { %v1212_v42 = vmul.f32 %v1210_v34, %v1206_v35  ;;  %1196 = vrot.lane.b32.xlu1 %v1274_v32, %s1474_s7 }
 0x31f   :  { %v1275_v45 = vpack.c.bf16 %v1212_v42, %v1212_v42 }
 0x320   :  { %v626_v46 = vpop.permute.xlu1 %625 }
 0x321   :  { %v1231_v21 = vpop.permute.xlu0 %1230  ;;  %v663_v23 = vmul.f32 %v626_v46, %v615_v43  ;;  %1217 = vrot.lane.b32.xlu0 %v1275_v45, %s1475_s8 }
 0x322   :  { %v1233_v26 = vmul.f32 %v1231_v21, %v1227_v17 }
 0x323   :  { %v1056_v24 = vadd.f32 %v1863_v11, %v663_v23 }
 0x324   :  { %v1276_v25 = vpack.c.bf16 %v1233_v26, %v1233_v26 }
 0x325   :  { %1064 = vst.msk [vmem:[#allocation4] sm:$0xff] %vm36_vm0, %v1056_v24  ;;  %v1090_v27 = vpop.permute.xlu0 %1089 }
 0x326   :  { %1238 = vrot.lane.b32.xlu1 %v1276_v25, %s1476_s9 }
 0x32c   :  { %v1086_v4 = vld [vmem:[#allocation4] sm:$0xff] }
 0x32d   :  { %v1092_v6 = vmul.f32 %v1090_v27, %v1086_v4 }
 0x32f   :  { %v1093_v8 = vpack.c.bf16 %v1092_v6, %v1092_v6 }
 0x331   :  { %1095 = vst.msk [vmem:[%s1901_s3] sm:$0xf] %vm1094_vm4, %v1093_v8 }
 0x37f   :  { %v1113_v30 = vpop.permute.xlu1 %1112 }
 0x380   :  { %1116 = vst.msk [vmem:[%s1901_s3] sm:$0xf] %vm1115_vm5, %v1113_v30 }
 0x383   :  { %v1134_v11 = vpop.permute.xlu0 %1133 }
 0x384   :  { %1137 = vst.msk [vmem:[%s1901_s3] sm:$0xf] %vm1136_vm6, %v1134_v11 }
 0x387   :  { %v1155_v36 = vpop.permute.xlu1 %1154 }
 0x388   :  { %1158 = vst.msk [vmem:[%s1901_s3] sm:$0xf] %vm1157_vm7, %v1155_v36 }
 0x38b   :  { %v1176_v33 = vpop.permute.xlu0 %1175 }
 0x38c   :  { %1179 = vst.msk [vmem:[%s1901_s3] sm:$0xf] %vm1178_vm8, %v1176_v33 }
 0x38f   :  { %v1197_v37 = vpop.permute.xlu1 %1196 }
 0x390   :  { %1200 = vst.msk [vmem:[%s1901_s3] sm:$0xf] %vm1199_vm9, %v1197_v37 }
 0x393   :  { %v1218_v47 = vpop.permute.xlu0 %1217 }
 0x394   :  { %1221 = vst.msk [vmem:[%s1901_s3] sm:$0xf] %vm1220_vm10, %v1218_v47 }
 0x398   :  { %v1239_v38 = vpop.permute.xlu1 %1238 }
 0x399   :  { %1242 = vst.msk [vmem:[%s1901_s3] sm:$0xf] %vm1241_vm11, %v1239_v38 }

</bundles_post_ra>
